<compile_context>
chip_gen: v7x
topology: tpu7x:2x2x1
jax: 0.10.0
libtpu: 0.0.40
codegen_flags: <defaults>
</compile_context>

<pallas_src>
import functools

import jax
import jax.numpy as jnp
from jax import lax
from jax.experimental import pallas as pl
from jax.experimental.pallas import tpu as pltpu


# ----------------------------------------------------------------------------
# Fused whole-encoder kernel (grid = (batch, layer))
# ----------------------------------------------------------------------------
def _bert_encoder_kernel(we_ref, pos_ref, type_ref, mask_ref,
                         emb_g_ref, emb_b_ref,
                         wqkv_ref, bqkv_ref, wo_ref, bo_ref,
                         ln1_g_ref, ln1_b_ref,
                         w1_ref, b1_ref, w2_ref, b2_ref,
                         ln2_g_ref, ln2_b_ref,
                         fc_w_ref, fc_b_ref,
                         o_ref,
                         h_ref, ctx_ref,
                         *, n_heads, eps):
    l = pl.program_id(1)
    n_layers = pl.num_programs(1)
    S, H = h_ref.shape
    dH = H // n_heads

    def ln(v, g, b):  # residual already summed into v; g/b are [1, H] f32
        mu = jnp.mean(v, axis=-1, keepdims=True)
        d = v - mu
        var = jnp.mean(d * d, axis=-1, keepdims=True)
        return d * lax.rsqrt(var + eps) * g + b

    # ---- layer 0: embedding sum + embedding LayerNorm into the activation ----
    @pl.when(l == 0)
    def _():
        e = (we_ref[0].astype(jnp.float32)
             + pos_ref[...].astype(jnp.float32)
             + type_ref[...].astype(jnp.float32))
        h_ref[...] = ln(e, emb_g_ref[...].astype(jnp.float32),
                        emb_b_ref[...].astype(jnp.float32))

    x = h_ref[...]                                   # [S, H] f32 (persistent)
    mask = mask_ref[0].astype(jnp.float32)           # [1, S] additive key mask

    # ---- fused QKV projection (scale pre-folded into Q weights) ----
    qkv = jnp.dot(x.astype(jnp.bfloat16), wqkv_ref[0],
                  preferred_element_type=jnp.float32)          # [S, 3H]
    qkv = qkv + bqkv_ref[0].astype(jnp.float32)

    # ---- multi-head attention; per-head ctx written straight into a slab ----
    for h in range(n_heads):                                   # static unrolled
        qh = qkv[:, h * dH:(h + 1) * dH]
        kh = qkv[:, H + h * dH:H + (h + 1) * dH]
        vh = qkv[:, 2 * H + h * dH:2 * H + (h + 1) * dH]
        s = lax.dot_general(qh.astype(jnp.bfloat16), kh.astype(jnp.bfloat16),
                            (((1,), (1,)), ((), ())),
                            preferred_element_type=jnp.float32)  # [S, S]
        s = s + mask
        s = s - jnp.max(s, axis=-1, keepdims=True)
        p = jnp.exp(s)
        p = p * pl.reciprocal(jnp.sum(p, axis=-1, keepdims=True), approx=True)
        ctx_ref[:, h * dH:(h + 1) * dH] = jnp.dot(
            p.astype(jnp.bfloat16), vh.astype(jnp.bfloat16),
            preferred_element_type=jnp.float32)                  # [S, dH]

    # ---- attention output projection + residual + LayerNorm ----
    attn = jnp.dot(ctx_ref[...].astype(jnp.bfloat16), wo_ref[0],
                   preferred_element_type=jnp.float32) + bo_ref[0].astype(jnp.float32)
    x1 = ln(x + attn,
            ln1_g_ref[0].astype(jnp.float32), ln1_b_ref[0].astype(jnp.float32))

    # ---- FFN (tanh-approx GELU) + residual + LayerNorm ----
    h1 = jnp.dot(x1.astype(jnp.bfloat16), w1_ref[0],
                 preferred_element_type=jnp.float32) + b1_ref[0].astype(jnp.float32)
    h1 = 0.5 * h1 * (1.0 + jnp.tanh(0.7978845608028654
                                    * (h1 + 0.044715 * h1 * h1 * h1)))
    ffn = jnp.dot(h1.astype(jnp.bfloat16), w2_ref[0],
                  preferred_element_type=jnp.float32) + b2_ref[0].astype(jnp.float32)
    x2 = ln(x1 + ffn,
            ln2_g_ref[0].astype(jnp.float32), ln2_b_ref[0].astype(jnp.float32))

    h_ref[...] = x2                                  # carry to the next layer

    # ---- last layer: CLS-token fc head fused into the epilogue ----
    @pl.when(l == n_layers - 1)
    def _():
        cls = x2[0:1, :]                                          # [1, H]
        y = jnp.dot(cls.astype(jnp.bfloat16), fc_w_ref[...],
                    preferred_element_type=jnp.float32)
        o_ref[0] = (y + fc_b_ref[...].astype(jnp.float32)).astype(o_ref.dtype)


def bert_encode(params, we, pos, type_row, mask_add, *, n_heads, eps=1e-12):
    """we: [B, S, H] word embeddings; mask_add: [B, 1, S] additive key mask.
    Returns fc(last_hidden_state[:, 0, :]) of shape [B, OUT]."""
    B, S, H = we.shape
    L, _, threeH = params["w_qkv"].shape
    I = params["w1"].shape[2]
    OUT = params["fc_w"].shape[1]

    def const(shape):
        n = len(shape)
        return pl.BlockSpec(shape, lambda b, l, _n=n: (0,) * _n)

    def per_batch(shape):
        return pl.BlockSpec((1,) + shape, lambda b, l: (b, 0, 0))

    def per_layer(shape):
        return pl.BlockSpec((1,) + shape, lambda b, l: (l, 0, 0))

    out = pl.pallas_call(
        functools.partial(_bert_encoder_kernel, n_heads=n_heads, eps=eps),
        out_shape=jax.ShapeDtypeStruct((B, 1, OUT), jnp.float32),
        grid=(B, L),
        in_specs=[
            per_batch((S, H)),                 # word embeddings
            const((S, H)),                     # positional embeddings
            const((1, H)),                     # token-type-0 embedding row
            per_batch((1, S)),                 # additive attention mask
            const((1, H)), const((1, H)),      # embedding LayerNorm gamma/beta
            per_layer((H, threeH)), per_layer((1, threeH)),   # fused QKV
            per_layer((H, H)), per_layer((1, H)),             # attn out proj
            per_layer((1, H)), per_layer((1, H)),             # LN1
            per_layer((H, I)), per_layer((1, I)),             # FFN in
            per_layer((I, H)), per_layer((1, H)),             # FFN out
            per_layer((1, H)), per_layer((1, H)),             # LN2
            const((H, OUT)), const((1, OUT)),                 # fc head
        ],
        out_specs=pl.BlockSpec((1, 1, OUT), lambda b, l: (b, 0, 0)),
        scratch_shapes=[
            pltpu.VMEM((S, H), jnp.float32),   # persistent activation
            pltpu.VMEM((S, H), jnp.float32),   # per-head context slab
        ],
        compiler_params=pltpu.CompilerParams(
            dimension_semantics=("parallel", "arbitrary"),
            vmem_limit_bytes=64 * 1024 * 1024),
    )(we, pos, type_row, mask_add,
      params["emb_ln_g"], params["emb_ln_b"],
      params["w_qkv"], params["b_qkv"], params["wo"], params["bo"],
      params["ln1_g"], params["ln1_b"],
      params["w1"], params["b1"], params["w2"], params["b2"],
      params["ln2_g"], params["ln2_b"],
      params["fc_w"], params["fc_b"])
    return out[:, 0, :]


# ----------------------------------------------------------------------------
# Model (plain-JAX glue around the single Pallas kernel)
# ----------------------------------------------------------------------------
def init_params(key, *, vocab, max_pos, hidden, n_heads, intermediate,
                n_layers, output_size):
    dH = hidden // n_heads

    def dense(k, shape, scale=0.02):
        return scale * jax.random.normal(k, shape, dtype=jnp.float32)

    keys = jax.random.split(key, 4 + n_layers)
    wqkv_l, wo_l, w1_l, w2_l = [], [], [], []
    for l in range(n_layers):
        lk = jax.random.split(keys[4 + l], 6)
        # Fold 1/sqrt(dH) attention scale into the Q columns at init time.
        wq = dense(lk[0], (hidden, hidden)) * (1.0 / float(dH) ** 0.5)
        wk = dense(lk[1], (hidden, hidden))
        wv = dense(lk[2], (hidden, hidden))
        wqkv_l.append(jnp.concatenate([wq, wk, wv], axis=1))
        wo_l.append(dense(lk[3], (hidden, hidden)))
        w1_l.append(dense(lk[4], (hidden, intermediate)))
        w2_l.append(dense(lk[5], (intermediate, hidden)))

    return {
        "word_emb": dense(keys[0], (vocab, hidden)),
        "pos_emb": dense(keys[1], (max_pos, hidden)),
        "type_emb": dense(keys[2], (2, hidden)),
        "emb_ln_g": jnp.ones((1, hidden), jnp.float32),
        "emb_ln_b": jnp.zeros((1, hidden), jnp.float32),
        # Per-layer weights stacked along a leading [L] axis; bf16 for the MXU.
        "w_qkv": jnp.stack(wqkv_l).astype(jnp.bfloat16),              # [L,H,3H]
        "b_qkv": jnp.zeros((n_layers, 1, 3 * hidden), jnp.float32),
        "wo": jnp.stack(wo_l).astype(jnp.bfloat16),                   # [L,H,H]
        "bo": jnp.zeros((n_layers, 1, hidden), jnp.float32),
        "ln1_g": jnp.ones((n_layers, 1, hidden), jnp.float32),
        "ln1_b": jnp.zeros((n_layers, 1, hidden), jnp.float32),
        "w1": jnp.stack(w1_l).astype(jnp.bfloat16),                   # [L,H,I]
        "b1": jnp.zeros((n_layers, 1, intermediate), jnp.float32),
        "w2": jnp.stack(w2_l).astype(jnp.bfloat16),                   # [L,I,H]
        "b2": jnp.zeros((n_layers, 1, hidden), jnp.float32),
        "ln2_g": jnp.ones((n_layers, 1, hidden), jnp.float32),
        "ln2_b": jnp.zeros((n_layers, 1, hidden), jnp.float32),
        "fc_w": dense(keys[3], (hidden, output_size)).astype(jnp.bfloat16),
        "fc_b": jnp.zeros((1, output_size), jnp.float32),
    }


def text_encoder_forward(params, input_ids, attention_mask, *, n_heads):
    """Equivalent of: fc(bert(input_ids, attention_mask).last_hidden_state[:, 0, :])."""
    B, S = input_ids.shape
    # TODO(synk): data-dependent word-embedding gather kept in plain JAX (not a
    # Pallas hot path); pos/type adds + embedding LN happen inside the kernel.
    we = jnp.take(params["word_emb"], input_ids, axis=0)          # [B, S, H]
    pos = params["pos_emb"][:S]                                   # [S, H]
    type_row = params["type_emb"][0:1]                            # [1, H] (token_type_ids == 0)
    mask_add = ((1.0 - attention_mask.astype(jnp.float32)) * -1e9).reshape(B, 1, S)
    return bert_encode(params, we, pos, type_row, mask_add, n_heads=n_heads)


# ----------------------------------------------------------------------------
# Main
# ----------------------------------------------------------------------------
if __name__ == "__main__":
    # Tiny BERT-like config (real BERT-base uses H=768, heads=12, I=3072, L=12,
    # which keeps every lane dim a multiple of 128 as the layout rules want).
    VOCAB, MAX_POS, HIDDEN, N_HEADS, INTER, N_LAYERS, OUT = 100, 16, 32, 4, 64, 2, 16
    B, S = 2, 8

    key = jax.random.PRNGKey(0)
    k_ids, k_params = jax.random.split(key)

    input_ids = jax.random.randint(k_ids, (B, S), 0, VOCAB, dtype=jnp.int32)
    attention_mask = jnp.array([[1, 1, 1, 1, 1, 1, 1, 1],
                                [1, 1, 1, 1, 1, 1, 0, 0]], dtype=jnp.int32)

    params = init_params(k_params, vocab=VOCAB, max_pos=MAX_POS, hidden=HIDDEN,
                         n_heads=N_HEADS, intermediate=INTER, n_layers=N_LAYERS,
                         output_size=OUT)

    fwd = jax.jit(functools.partial(text_encoder_forward, n_heads=N_HEADS))
    out = jax.block_until_ready(fwd(params, input_ids, attention_mask))

    assert out.shape == (B, OUT) and bool(jnp.all(jnp.isfinite(out)))
    print("KERNEL_OK")
</pallas_src>

<mosaic_0001>
module attributes {stable_mosaic.version = 11 : i64} {
  func.func @_bert_encoder_kernel(%arg0: i32, %arg1: i32, %arg2: memref<1x8x32xf32, #tpu.memory_space<vmem>>, %arg3: memref<8x32xf32, #tpu.memory_space<vmem>>, %arg4: memref<1x32xf32, #tpu.memory_space<vmem>>, %arg5: memref<1x1x8xf32, #tpu.memory_space<vmem>>, %arg6: memref<1x32xf32, #tpu.memory_space<vmem>>, %arg7: memref<1x32xf32, #tpu.memory_space<vmem>>, %arg8: memref<1x32x96xbf16, #tpu.memory_space<vmem>>, %arg9: memref<1x1x96xf32, #tpu.memory_space<vmem>>, %arg10: memref<1x32x32xbf16, #tpu.memory_space<vmem>>, %arg11: memref<1x1x32xf32, #tpu.memory_space<vmem>>, %arg12: memref<1x1x32xf32, #tpu.memory_space<vmem>>, %arg13: memref<1x1x32xf32, #tpu.memory_space<vmem>>, %arg14: memref<1x32x64xbf16, #tpu.memory_space<vmem>>, %arg15: memref<1x1x64xf32, #tpu.memory_space<vmem>>, %arg16: memref<1x64x32xbf16, #tpu.memory_space<vmem>>, %arg17: memref<1x1x32xf32, #tpu.memory_space<vmem>>, %arg18: memref<1x1x32xf32, #tpu.memory_space<vmem>>, %arg19: memref<1x1x32xf32, #tpu.memory_space<vmem>>, %arg20: memref<32x16xbf16, #tpu.memory_space<vmem>>, %arg21: memref<1x16xf32, #tpu.memory_space<vmem>>, %arg22: memref<1x1x16xf32, #tpu.memory_space<vmem>>, %arg23: memref<8x32xf32, #tpu.memory_space<vmem>>, %arg24: memref<8x32xf32, #tpu.memory_space<vmem>>) attributes {dimension_semantics = [#tpu.dimension_semantics<parallel>, #tpu.dimension_semantics<arbitrary>], iteration_bounds = array<i64: 2, 2>, scalar_prefetch = 0 : i64, scratch_operands = 2 : i64, tpu.core_type = #tpu.core_type<tc>, window_params = [{transform_indices = @transform_0, window_bounds = array<i64: 1, 8, 32>}, {pipeline_mode = #tpu.pipeline_mode<synchronous>, transform_indices = @transform_1, window_bounds = array<i64: 8, 32>}, {pipeline_mode = #tpu.pipeline_mode<synchronous>, transform_indices = @transform_2, window_bounds = array<i64: 1, 32>}, {transform_indices = @transform_3, window_bounds = array<i64: 1, 1, 8>}, {pipeline_mode = #tpu.pipeline_mode<synchronous>, transform_indices = @transform_4, window_bounds = array<i64: 1, 32>}, {pipeline_mode = #tpu.pipeline_mode<synchronous>, transform_indices = @transform_5, window_bounds = array<i64: 1, 32>}, {transform_indices = @transform_6, window_bounds = array<i64: 1, 32, 96>}, {transform_indices = @transform_7, window_bounds = array<i64: 1, 1, 96>}, {transform_indices = @transform_8, window_bounds = array<i64: 1, 32, 32>}, {transform_indices = @transform_9, window_bounds = array<i64: 1, 1, 32>}, {transform_indices = @transform_10, window_bounds = array<i64: 1, 1, 32>}, {transform_indices = @transform_11, window_bounds = array<i64: 1, 1, 32>}, {transform_indices = @transform_12, window_bounds = array<i64: 1, 32, 64>}, {transform_indices = @transform_13, window_bounds = array<i64: 1, 1, 64>}, {transform_indices = @transform_14, window_bounds = array<i64: 1, 64, 32>}, {transform_indices = @transform_15, window_bounds = array<i64: 1, 1, 32>}, {transform_indices = @transform_16, window_bounds = array<i64: 1, 1, 32>}, {transform_indices = @transform_17, window_bounds = array<i64: 1, 1, 32>}, {pipeline_mode = #tpu.pipeline_mode<synchronous>, transform_indices = @transform_18, window_bounds = array<i64: 32, 16>}, {pipeline_mode = #tpu.pipeline_mode<synchronous>, transform_indices = @transform_19, window_bounds = array<i64: 1, 16>}, {transform_indices = @transform_20, window_bounds = array<i64: 1, 1, 16>}]} {
    %c0_i32 = arith.constant 0 : i32
    %0 = arith.cmpi eq, %arg1, %c0_i32 : i32
    %1 = arith.extui %0 : i1 to i32
    %c0_i32_0 = arith.constant 0 : i32
    %2 = arith.cmpi ne, %1, %c0_i32_0 : i32
    scf.if %2 {
      %c0_84 = arith.constant 0 : index
      %c0_85 = arith.constant 0 : index
      %c0_86 = arith.constant 0 : index
      %194 = vector.load %arg2[%c0_84, %c0_85, %c0_86] : memref<1x8x32xf32, #tpu.memory_space<vmem>>, vector<1x8x32xf32>
      %195 = vector.shape_cast %194 : vector<1x8x32xf32> to vector<8x32xf32>
      %c0_87 = arith.constant 0 : index
      %c0_88 = arith.constant 0 : index
      %196 = vector.load %arg3[%c0_87, %c0_88] : memref<8x32xf32, #tpu.memory_space<vmem>>, vector<8x32xf32>
      %197 = arith.addf %195, %196 : vector<8x32xf32>
      %c0_89 = arith.constant 0 : index
      %c0_90 = arith.constant 0 : index
      %198 = vector.load %arg4[%c0_89, %c0_90] : memref<1x32xf32, #tpu.memory_space<vmem>>, vector<1x32xf32>
      %199 = vector.broadcast %198 : vector<1x32xf32> to vector<8x32xf32>
      %200 = arith.addf %197, %199 : vector<8x32xf32>
      %c0_91 = arith.constant 0 : index
      %c0_92 = arith.constant 0 : index
      %201 = vector.load %arg6[%c0_91, %c0_92] : memref<1x32xf32, #tpu.memory_space<vmem>>, vector<1x32xf32>
      %c0_93 = arith.constant 0 : index
      %c0_94 = arith.constant 0 : index
      %202 = vector.load %arg7[%c0_93, %c0_94] : memref<1x32xf32, #tpu.memory_space<vmem>>, vector<1x32xf32>
      %cst_95 = arith.constant dense<0.000000e+00> : vector<8xf32>
      %203 = vector.multi_reduction <add>, %200, %cst_95 [1] : vector<8x32xf32> to vector<8xf32>
      %204 = vector.shape_cast %203 : vector<8xf32> to vector<8x1xf32>
      %cst_96 = arith.constant 3.200000e+01 : f32
      %205 = vector.broadcast %cst_96 : f32 to vector<8x1xf32>
      %206 = arith.divf %204, %205 : vector<8x1xf32>
      %207 = vector.broadcast %206 : vector<8x1xf32> to vector<8x32xf32>
      %208 = arith.subf %200, %207 : vector<8x32xf32>
      %209 = arith.mulf %208, %208 : vector<8x32xf32>
      %cst_97 = arith.constant dense<0.000000e+00> : vector<8xf32>
      %210 = vector.multi_reduction <add>, %209, %cst_97 [1] : vector<8x32xf32> to vector<8xf32>
      %211 = vector.shape_cast %210 : vector<8xf32> to vector<8x1xf32>
      %cst_98 = arith.constant 3.200000e+01 : f32
      %212 = vector.broadcast %cst_98 : f32 to vector<8x1xf32>
      %213 = arith.divf %211, %212 : vector<8x1xf32>
      %cst_99 = arith.constant 9.99999996E-13 : f32
      %214 = vector.broadcast %cst_99 : f32 to vector<8x1xf32>
      %215 = arith.addf %213, %214 : vector<8x1xf32>
      %216 = math.rsqrt %215 : vector<8x1xf32>
      %217 = vector.broadcast %216 : vector<8x1xf32> to vector<8x32xf32>
      %218 = arith.mulf %208, %217 : vector<8x32xf32>
      %219 = vector.broadcast %201 : vector<1x32xf32> to vector<8x32xf32>
      %220 = arith.mulf %218, %219 : vector<8x32xf32>
      %221 = vector.broadcast %202 : vector<1x32xf32> to vector<8x32xf32>
      %222 = arith.addf %220, %221 : vector<8x32xf32>
      %c0_100 = arith.constant 0 : index
      %c0_101 = arith.constant 0 : index
      %223 = vector.load %arg23[%c0_100, %c0_101] : memref<8x32xf32, #tpu.memory_space<vmem>>, vector<8x32xf32>
      tpu.vector_store %arg23[%c0_100, %c0_101], %222 {strides = array<i32>} : memref<8x32xf32, #tpu.memory_space<vmem>>, vector<8x32xf32>,
    } else {
    }
    %c0 = arith.constant 0 : index
    %c0_1 = arith.constant 0 : index
    %3 = vector.load %arg23[%c0, %c0_1] : memref<8x32xf32, #tpu.memory_space<vmem>>, vector<8x32xf32>
    %c0_2 = arith.constant 0 : index
    %c0_3 = arith.constant 0 : index
    %c0_4 = arith.constant 0 : index
    %4 = vector.load %arg5[%c0_2, %c0_3, %c0_4] : memref<1x1x8xf32, #tpu.memory_space<vmem>>, vector<1x1x8xf32>
    %5 = vector.shape_cast %4 : vector<1x1x8xf32> to vector<1x8xf32>
    %6 = arith.truncf %3 : vector<8x32xf32> to vector<8x32xbf16>
    %c0_5 = arith.constant 0 : index
    %c0_6 = arith.constant 0 : index
    %c0_7 = arith.constant 0 : index
    %7 = vector.load %arg8[%c0_5, %c0_6, %c0_7] : memref<1x32x96xbf16, #tpu.memory_space<vmem>>, vector<1x32x96xbf16>
    %8 = vector.shape_cast %7 : vector<1x32x96xbf16> to vector<32x96xbf16>
    %cst = arith.constant dense<0.000000e+00> : vector<8x96xf32>
    %9 = tpu.matmul %6, %8, %cst {dimension_numbers = #tpu.dot_dimension_numbers<[1], [0], [0], [1], [0, 0, 1, 1], [], []>} : vector<8x32xbf16>, vector<32x96xbf16>, vector<8x96xf32> -> vector<8x96xf32>
    %c0_8 = arith.constant 0 : index
    %c0_9 = arith.constant 0 : index
    %c0_10 = arith.constant 0 : index
    %10 = vector.load %arg9[%c0_8, %c0_9, %c0_10] : memref<1x1x96xf32, #tpu.memory_space<vmem>>, vector<1x1x96xf32>
    %11 = vector.shape_cast %10 : vector<1x1x96xf32> to vector<1x96xf32>
    %12 = vector.broadcast %11 : vector<1x96xf32> to vector<8x96xf32>
    %13 = arith.addf %9, %12 : vector<8x96xf32>
    %14 = vector.extract_strided_slice %13 {offsets = [0, 0], sizes = [8, 8], strides = [1, 1]} : vector<8x96xf32> to vector<8x8xf32>
    %15 = vector.extract_strided_slice %13 {offsets = [0, 32], sizes = [8, 8], strides = [1, 1]} : vector<8x96xf32> to vector<8x8xf32>
    %16 = vector.extract_strided_slice %13 {offsets = [0, 64], sizes = [8, 8], strides = [1, 1]} : vector<8x96xf32> to vector<8x8xf32>
    %17 = arith.truncf %14 : vector<8x8xf32> to vector<8x8xbf16>
    %18 = arith.truncf %15 : vector<8x8xf32> to vector<8x8xbf16>
    %cst_11 = arith.constant dense<0.000000e+00> : vector<8x8xf32>
    %19 = tpu.matmul %17, %18, %cst_11 {dimension_numbers = #tpu.dot_dimension_numbers<[1], [1], [0], [0], [0, 0, 1, 0], [], []>} : vector<8x8xbf16>, vector<8x8xbf16>, vector<8x8xf32> -> vector<8x8xf32>
    %20 = vector.broadcast %5 : vector<1x8xf32> to vector<8x8xf32>
    %21 = arith.addf %19, %20 : vector<8x8xf32>
    %cst_12 = arith.constant dense<0xFF800000> : vector<8xf32>
    %22 = vector.multi_reduction <maximumf>, %21, %cst_12 [1] : vector<8x8xf32> to vector<8xf32>
    %23 = vector.shape_cast %22 : vector<8xf32> to vector<8x1xf32>
    %24 = vector.broadcast %23 : vector<8x1xf32> to vector<8x8xf32>
    %25 = arith.subf %21, %24 : vector<8x8xf32>
    %26 = math.exp %25 : vector<8x8xf32>
    %cst_13 = arith.constant dense<0.000000e+00> : vector<8xf32>
    %27 = vector.multi_reduction <add>, %26, %cst_13 [1] : vector<8x8xf32> to vector<8xf32>
    %28 = vector.shape_cast %27 : vector<8xf32> to vector<8x1xf32>
    %29 = tpu.reciprocal %28 {approx = true} : vector<8x1xf32> -> vector<8x1xf32>
    %30 = vector.broadcast %29 : vector<8x1xf32> to vector<8x8xf32>
    %31 = arith.mulf %26, %30 : vector<8x8xf32>
    %32 = arith.truncf %31 : vector<8x8xf32> to vector<8x8xbf16>
    %33 = arith.truncf %16 : vector<8x8xf32> to vector<8x8xbf16>
    %cst_14 = arith.constant dense<0.000000e+00> : vector<8x8xf32>
    %34 = tpu.matmul %32, %33, %cst_14 {dimension_numbers = #tpu.dot_dimension_numbers<[1], [0], [0], [1], [0, 0, 1, 1], [], []>} : vector<8x8xbf16>, vector<8x8xbf16>, vector<8x8xf32> -> vector<8x8xf32>
    %c0_15 = arith.constant 0 : index
    %c0_16 = arith.constant 0 : index
    %35 = vector.load %arg24[%c0_15, %c0_16] : memref<8x32xf32, #tpu.memory_space<vmem>>, vector<8x8xf32>
    tpu.vector_store %arg24[%c0_15, %c0_16], %34 {strides = array<i32>} : memref<8x32xf32, #tpu.memory_space<vmem>>, vector<8x8xf32>,
    %36 = vector.extract_strided_slice %13 {offsets = [0, 8], sizes = [8, 8], strides = [1, 1]} : vector<8x96xf32> to vector<8x8xf32>
    %37 = vector.extract_strided_slice %13 {offsets = [0, 40], sizes = [8, 8], strides = [1, 1]} : vector<8x96xf32> to vector<8x8xf32>
    %38 = vector.extract_strided_slice %13 {offsets = [0, 72], sizes = [8, 8], strides = [1, 1]} : vector<8x96xf32> to vector<8x8xf32>
    %39 = arith.truncf %36 : vector<8x8xf32> to vector<8x8xbf16>
    %40 = arith.truncf %37 : vector<8x8xf32> to vector<8x8xbf16>
    %cst_17 = arith.constant dense<0.000000e+00> : vector<8x8xf32>
    %41 = tpu.matmul %39, %40, %cst_17 {dimension_numbers = #tpu.dot_dimension_numbers<[1], [1], [0], [0], [0, 0, 1, 0], [], []>} : vector<8x8xbf16>, vector<8x8xbf16>, vector<8x8xf32> -> vector<8x8xf32>
    %42 = vector.broadcast %5 : vector<1x8xf32> to vector<8x8xf32>
    %43 = arith.addf %41, %42 : vector<8x8xf32>
    %cst_18 = arith.constant dense<0xFF800000> : vector<8xf32>
    %44 = vector.multi_reduction <maximumf>, %43, %cst_18 [1] : vector<8x8xf32> to vector<8xf32>
    %45 = vector.shape_cast %44 : vector<8xf32> to vector<8x1xf32>
    %46 = vector.broadcast %45 : vector<8x1xf32> to vector<8x8xf32>
    %47 = arith.subf %43, %46 : vector<8x8xf32>
    %48 = math.exp %47 : vector<8x8xf32>
    %cst_19 = arith.constant dense<0.000000e+00> : vector<8xf32>
    %49 = vector.multi_reduction <add>, %48, %cst_19 [1] : vector<8x8xf32> to vector<8xf32>
    %50 = vector.shape_cast %49 : vector<8xf32> to vector<8x1xf32>
    %51 = tpu.reciprocal %50 {approx = true} : vector<8x1xf32> -> vector<8x1xf32>
    %52 = vector.broadcast %51 : vector<8x1xf32> to vector<8x8xf32>
    %53 = arith.mulf %48, %52 : vector<8x8xf32>
    %54 = arith.truncf %53 : vector<8x8xf32> to vector<8x8xbf16>
    %55 = arith.truncf %38 : vector<8x8xf32> to vector<8x8xbf16>
    %cst_20 = arith.constant dense<0.000000e+00> : vector<8x8xf32>
    %56 = tpu.matmul %54, %55, %cst_20 {dimension_numbers = #tpu.dot_dimension_numbers<[1], [0], [0], [1], [0, 0, 1, 1], [], []>} : vector<8x8xbf16>, vector<8x8xbf16>, vector<8x8xf32> -> vector<8x8xf32>
    %c0_21 = arith.constant 0 : index
    %c8 = arith.constant 8 : index
    %57 = vector.load %arg24[%c0_21, %c8] : memref<8x32xf32, #tpu.memory_space<vmem>>, vector<8x8xf32>
    tpu.vector_store %arg24[%c0_21, %c8], %56 {strides = array<i32>} : memref<8x32xf32, #tpu.memory_space<vmem>>, vector<8x8xf32>,
    %58 = vector.extract_strided_slice %13 {offsets = [0, 16], sizes = [8, 8], strides = [1, 1]} : vector<8x96xf32> to vector<8x8xf32>
    %59 = vector.extract_strided_slice %13 {offsets = [0, 48], sizes = [8, 8], strides = [1, 1]} : vector<8x96xf32> to vector<8x8xf32>
    %60 = vector.extract_strided_slice %13 {offsets = [0, 80], sizes = [8, 8], strides = [1, 1]} : vector<8x96xf32> to vector<8x8xf32>
    %61 = arith.truncf %58 : vector<8x8xf32> to vector<8x8xbf16>
    %62 = arith.truncf %59 : vector<8x8xf32> to vector<8x8xbf16>
    %cst_22 = arith.constant dense<0.000000e+00> : vector<8x8xf32>
    %63 = tpu.matmul %61, %62, %cst_22 {dimension_numbers = #tpu.dot_dimension_numbers<[1], [1], [0], [0], [0, 0, 1, 0], [], []>} : vector<8x8xbf16>, vector<8x8xbf16>, vector<8x8xf32> -> vector<8x8xf32>
    %64 = vector.broadcast %5 : vector<1x8xf32> to vector<8x8xf32>
    %65 = arith.addf %63, %64 : vector<8x8xf32>
    %cst_23 = arith.constant dense<0xFF800000> : vector<8xf32>
    %66 = vector.multi_reduction <maximumf>, %65, %cst_23 [1] : vector<8x8xf32> to vector<8xf32>
    %67 = vector.shape_cast %66 : vector<8xf32> to vector<8x1xf32>
    %68 = vector.broadcast %67 : vector<8x1xf32> to vector<8x8xf32>
    %69 = arith.subf %65, %68 : vector<8x8xf32>
    %70 = math.exp %69 : vector<8x8xf32>
    %cst_24 = arith.constant dense<0.000000e+00> : vector<8xf32>
    %71 = vector.multi_reduction <add>, %70, %cst_24 [1] : vector<8x8xf32> to vector<8xf32>
    %72 = vector.shape_cast %71 : vector<8xf32> to vector<8x1xf32>
    %73 = tpu.reciprocal %72 {approx = true} : vector<8x1xf32> -> vector<8x1xf32>
    %74 = vector.broadcast %73 : vector<8x1xf32> to vector<8x8xf32>
    %75 = arith.mulf %70, %74 : vector<8x8xf32>
    %76 = arith.truncf %75 : vector<8x8xf32> to vector<8x8xbf16>
    %77 = arith.truncf %60 : vector<8x8xf32> to vector<8x8xbf16>
    %cst_25 = arith.constant dense<0.000000e+00> : vector<8x8xf32>
    %78 = tpu.matmul %76, %77, %cst_25 {dimension_numbers = #tpu.dot_dimension_numbers<[1], [0], [0], [1], [0, 0, 1, 1], [], []>} : vector<8x8xbf16>, vector<8x8xbf16>, vector<8x8xf32> -> vector<8x8xf32>
    %c0_26 = arith.constant 0 : index
    %c16 = arith.constant 16 : index
    %79 = vector.load %arg24[%c0_26, %c16] : memref<8x32xf32, #tpu.memory_space<vmem>>, vector<8x8xf32>
    tpu.vector_store %arg24[%c0_26, %c16], %78 {strides = array<i32>} : memref<8x32xf32, #tpu.memory_space<vmem>>, vector<8x8xf32>,
    %80 = vector.extract_strided_slice %13 {offsets = [0, 24], sizes = [8, 8], strides = [1, 1]} : vector<8x96xf32> to vector<8x8xf32>
    %81 = vector.extract_strided_slice %13 {offsets = [0, 56], sizes = [8, 8], strides = [1, 1]} : vector<8x96xf32> to vector<8x8xf32>
    %82 = vector.extract_strided_slice %13 {offsets = [0, 88], sizes = [8, 8], strides = [1, 1]} : vector<8x96xf32> to vector<8x8xf32>
    %83 = arith.truncf %80 : vector<8x8xf32> to vector<8x8xbf16>
    %84 = arith.truncf %81 : vector<8x8xf32> to vector<8x8xbf16>
    %cst_27 = arith.constant dense<0.000000e+00> : vector<8x8xf32>
    %85 = tpu.matmul %83, %84, %cst_27 {dimension_numbers = #tpu.dot_dimension_numbers<[1], [1], [0], [0], [0, 0, 1, 0], [], []>} : vector<8x8xbf16>, vector<8x8xbf16>, vector<8x8xf32> -> vector<8x8xf32>
    %86 = vector.broadcast %5 : vector<1x8xf32> to vector<8x8xf32>
    %87 = arith.addf %85, %86 : vector<8x8xf32>
    %cst_28 = arith.constant dense<0xFF800000> : vector<8xf32>
    %88 = vector.multi_reduction <maximumf>, %87, %cst_28 [1] : vector<8x8xf32> to vector<8xf32>
    %89 = vector.shape_cast %88 : vector<8xf32> to vector<8x1xf32>
    %90 = vector.broadcast %89 : vector<8x1xf32> to vector<8x8xf32>
    %91 = arith.subf %87, %90 : vector<8x8xf32>
    %92 = math.exp %91 : vector<8x8xf32>
    %cst_29 = arith.constant dense<0.000000e+00> : vector<8xf32>
    %93 = vector.multi_reduction <add>, %92, %cst_29 [1] : vector<8x8xf32> to vector<8xf32>
    %94 = vector.shape_cast %93 : vector<8xf32> to vector<8x1xf32>
    %95 = tpu.reciprocal %94 {approx = true} : vector<8x1xf32> -> vector<8x1xf32>
    %96 = vector.broadcast %95 : vector<8x1xf32> to vector<8x8xf32>
    %97 = arith.mulf %92, %96 : vector<8x8xf32>
    %98 = arith.truncf %97 : vector<8x8xf32> to vector<8x8xbf16>
    %99 = arith.truncf %82 : vector<8x8xf32> to vector<8x8xbf16>
    %cst_30 = arith.constant dense<0.000000e+00> : vector<8x8xf32>
    %100 = tpu.matmul %98, %99, %cst_30 {dimension_numbers = #tpu.dot_dimension_numbers<[1], [0], [0], [1], [0, 0, 1, 1], [], []>} : vector<8x8xbf16>, vector<8x8xbf16>, vector<8x8xf32> -> vector<8x8xf32>
    %c0_31 = arith.constant 0 : index
    %c24 = arith.constant 24 : index
    %101 = vector.load %arg24[%c0_31, %c24] : memref<8x32xf32, #tpu.memory_space<vmem>>, vector<8x8xf32>
    tpu.vector_store %arg24[%c0_31, %c24], %100 {strides = array<i32>} : memref<8x32xf32, #tpu.memory_space<vmem>>, vector<8x8xf32>,
    %c0_32 = arith.constant 0 : index
    %c0_33 = arith.constant 0 : index
    %102 = vector.load %arg24[%c0_32, %c0_33] : memref<8x32xf32, #tpu.memory_space<vmem>>, vector<8x32xf32>
    %103 = arith.truncf %102 : vector<8x32xf32> to vector<8x32xbf16>
    %c0_34 = arith.constant 0 : index
    %c0_35 = arith.constant 0 : index
    %c0_36 = arith.constant 0 : index
    %104 = vector.load %arg10[%c0_34, %c0_35, %c0_36] : memref<1x32x32xbf16, #tpu.memory_space<vmem>>, vector<1x32x32xbf16>
    %105 = vector.shape_cast %104 : vector<1x32x32xbf16> to vector<32x32xbf16>
    %cst_37 = arith.constant dense<0.000000e+00> : vector<8x32xf32>
    %106 = tpu.matmul %103, %105, %cst_37 {dimension_numbers = #tpu.dot_dimension_numbers<[1], [0], [0], [1], [0, 0, 1, 1], [], []>} : vector<8x32xbf16>, vector<32x32xbf16>, vector<8x32xf32> -> vector<8x32xf32>
    %c0_38 = arith.constant 0 : index
    %c0_39 = arith.constant 0 : index
    %c0_40 = arith.constant 0 : index
    %107 = vector.load %arg11[%c0_38, %c0_39, %c0_40] : memref<1x1x32xf32, #tpu.memory_space<vmem>>, vector<1x1x32xf32>
    %108 = vector.shape_cast %107 : vector<1x1x32xf32> to vector<1x32xf32>
    %109 = vector.broadcast %108 : vector<1x32xf32> to vector<8x32xf32>
    %110 = arith.addf %106, %109 : vector<8x32xf32>
    %111 = arith.addf %3, %110 : vector<8x32xf32>
    %c0_41 = arith.constant 0 : index
    %c0_42 = arith.constant 0 : index
    %c0_43 = arith.constant 0 : index
    %112 = vector.load %arg12[%c0_41, %c0_42, %c0_43] : memref<1x1x32xf32, #tpu.memory_space<vmem>>, vector<1x1x32xf32>
    %113 = vector.shape_cast %112 : vector<1x1x32xf32> to vector<1x32xf32>
    %c0_44 = arith.constant 0 : index
    %c0_45 = arith.constant 0 : index
    %c0_46 = arith.constant 0 : index
    %114 = vector.load %arg13[%c0_44, %c0_45, %c0_46] : memref<1x1x32xf32, #tpu.memory_space<vmem>>, vector<1x1x32xf32>
    %115 = vector.shape_cast %114 : vector<1x1x32xf32> to vector<1x32xf32>
    %cst_47 = arith.constant dense<0.000000e+00> : vector<8xf32>
    %116 = vector.multi_reduction <add>, %111, %cst_47 [1] : vector<8x32xf32> to vector<8xf32>
    %117 = vector.shape_cast %116 : vector<8xf32> to vector<8x1xf32>
    %cst_48 = arith.constant 3.200000e+01 : f32
    %118 = vector.broadcast %cst_48 : f32 to vector<8x1xf32>
    %119 = arith.divf %117, %118 : vector<8x1xf32>
    %120 = vector.broadcast %119 : vector<8x1xf32> to vector<8x32xf32>
    %121 = arith.subf %111, %120 : vector<8x32xf32>
    %122 = arith.mulf %121, %121 : vector<8x32xf32>
    %cst_49 = arith.constant dense<0.000000e+00> : vector<8xf32>
    %123 = vector.multi_reduction <add>, %122, %cst_49 [1] : vector<8x32xf32> to vector<8xf32>
    %124 = vector.shape_cast %123 : vector<8xf32> to vector<8x1xf32>
    %cst_50 = arith.constant 3.200000e+01 : f32
    %125 = vector.broadcast %cst_50 : f32 to vector<8x1xf32>
    %126 = arith.divf %124, %125 : vector<8x1xf32>
    %cst_51 = arith.constant 9.99999996E-13 : f32
    %127 = vector.broadcast %cst_51 : f32 to vector<8x1xf32>
    %128 = arith.addf %126, %127 : vector<8x1xf32>
    %129 = math.rsqrt %128 : vector<8x1xf32>
    %130 = vector.broadcast %129 : vector<8x1xf32> to vector<8x32xf32>
    %131 = arith.mulf %121, %130 : vector<8x32xf32>
    %132 = vector.broadcast %113 : vector<1x32xf32> to vector<8x32xf32>
    %133 = arith.mulf %131, %132 : vector<8x32xf32>
    %134 = vector.broadcast %115 : vector<1x32xf32> to vector<8x32xf32>
    %135 = arith.addf %133, %134 : vector<8x32xf32>
    %136 = arith.truncf %135 : vector<8x32xf32> to vector<8x32xbf16>
    %c0_52 = arith.constant 0 : index
    %c0_53 = arith.constant 0 : index
    %c0_54 = arith.constant 0 : index
    %137 = vector.load %arg14[%c0_52, %c0_53, %c0_54] : memref<1x32x64xbf16, #tpu.memory_space<vmem>>, vector<1x32x64xbf16>
    %138 = vector.shape_cast %137 : vector<1x32x64xbf16> to vector<32x64xbf16>
    %cst_55 = arith.constant dense<0.000000e+00> : vector<8x64xf32>
    %139 = tpu.matmul %136, %138, %cst_55 {dimension_numbers = #tpu.dot_dimension_numbers<[1], [0], [0], [1], [0, 0, 1, 1], [], []>} : vector<8x32xbf16>, vector<32x64xbf16>, vector<8x64xf32> -> vector<8x64xf32>
    %c0_56 = arith.constant 0 : index
    %c0_57 = arith.constant 0 : index
    %c0_58 = arith.constant 0 : index
    %140 = vector.load %arg15[%c0_56, %c0_57, %c0_58] : memref<1x1x64xf32, #tpu.memory_space<vmem>>, vector<1x1x64xf32>
    %141 = vector.shape_cast %140 : vector<1x1x64xf32> to vector<1x64xf32>
    %142 = vector.broadcast %141 : vector<1x64xf32> to vector<8x64xf32>
    %143 = arith.addf %139, %142 : vector<8x64xf32>
    %cst_59 = arith.constant 5.000000e-01 : f32
    %144 = vector.broadcast %cst_59 : f32 to vector<8x64xf32>
    %145 = arith.mulf %144, %143 : vector<8x64xf32>
    %cst_60 = arith.constant 4.471500e-02 : f32
    %146 = vector.broadcast %cst_60 : f32 to vector<8x64xf32>
    %147 = arith.mulf %146, %143 : vector<8x64xf32>
    %148 = arith.mulf %147, %143 : vector<8x64xf32>
    %149 = arith.mulf %148, %143 : vector<8x64xf32>
    %150 = arith.addf %143, %149 : vector<8x64xf32>
    %cst_61 = arith.constant 0.797884583 : f32
    %151 = vector.broadcast %cst_61 : f32 to vector<8x64xf32>
    %152 = arith.mulf %151, %150 : vector<8x64xf32>
    %153 = math.tanh %152 : vector<8x64xf32>
    %cst_62 = arith.constant 1.000000e+00 : f32
    %154 = vector.broadcast %cst_62 : f32 to vector<8x64xf32>
    %155 = arith.addf %154, %153 : vector<8x64xf32>
    %156 = arith.mulf %145, %155 : vector<8x64xf32>
    %157 = arith.truncf %156 : vector<8x64xf32> to vector<8x64xbf16>
    %c0_63 = arith.constant 0 : index
    %c0_64 = arith.constant 0 : index
    %c0_65 = arith.constant 0 : index
    %158 = vector.load %arg16[%c0_63, %c0_64, %c0_65] : memref<1x64x32xbf16, #tpu.memory_space<vmem>>, vector<1x64x32xbf16>
    %159 = vector.shape_cast %158 : vector<1x64x32xbf16> to vector<64x32xbf16>
    %cst_66 = arith.constant dense<0.000000e+00> : vector<8x32xf32>
    %160 = tpu.matmul %157, %159, %cst_66 {dimension_numbers = #tpu.dot_dimension_numbers<[1], [0], [0], [1], [0, 0, 1, 1], [], []>} : vector<8x64xbf16>, vector<64x32xbf16>, vector<8x32xf32> -> vector<8x32xf32>
    %c0_67 = arith.constant 0 : index
    %c0_68 = arith.constant 0 : index
    %c0_69 = arith.constant 0 : index
    %161 = vector.load %arg17[%c0_67, %c0_68, %c0_69] : memref<1x1x32xf32, #tpu.memory_space<vmem>>, vector<1x1x32xf32>
    %162 = vector.shape_cast %161 : vector<1x1x32xf32> to vector<1x32xf32>
    %163 = vector.broadcast %162 : vector<1x32xf32> to vector<8x32xf32>
    %164 = arith.addf %160, %163 : vector<8x32xf32>
    %165 = arith.addf %135, %164 : vector<8x32xf32>
    %c0_70 = arith.constant 0 : index
    %c0_71 = arith.constant 0 : index
    %c0_72 = arith.constant 0 : index
    %166 = vector.load %arg18[%c0_70, %c0_71, %c0_72] : memref<1x1x32xf32, #tpu.memory_space<vmem>>, vector<1x1x32xf32>
    %167 = vector.shape_cast %166 : vector<1x1x32xf32> to vector<1x32xf32>
    %c0_73 = arith.constant 0 : index
    %c0_74 = arith.constant 0 : index
    %c0_75 = arith.constant 0 : index
    %168 = vector.load %arg19[%c0_73, %c0_74, %c0_75] : memref<1x1x32xf32, #tpu.memory_space<vmem>>, vector<1x1x32xf32>
    %169 = vector.shape_cast %168 : vector<1x1x32xf32> to vector<1x32xf32>
    %cst_76 = arith.constant dense<0.000000e+00> : vector<8xf32>
    %170 = vector.multi_reduction <add>, %165, %cst_76 [1] : vector<8x32xf32> to vector<8xf32>
    %171 = vector.shape_cast %170 : vector<8xf32> to vector<8x1xf32>
    %cst_77 = arith.constant 3.200000e+01 : f32
    %172 = vector.broadcast %cst_77 : f32 to vector<8x1xf32>
    %173 = arith.divf %171, %172 : vector<8x1xf32>
    %174 = vector.broadcast %173 : vector<8x1xf32> to vector<8x32xf32>
    %175 = arith.subf %165, %174 : vector<8x32xf32>
    %176 = arith.mulf %175, %175 : vector<8x32xf32>
    %cst_78 = arith.constant dense<0.000000e+00> : vector<8xf32>
    %177 = vector.multi_reduction <add>, %176, %cst_78 [1] : vector<8x32xf32> to vector<8xf32>
    %178 = vector.shape_cast %177 : vector<8xf32> to vector<8x1xf32>
    %cst_79 = arith.constant 3.200000e+01 : f32
    %179 = vector.broadcast %cst_79 : f32 to vector<8x1xf32>
    %180 = arith.divf %178, %179 : vector<8x1xf32>
    %cst_80 = arith.constant 9.99999996E-13 : f32
    %181 = vector.broadcast %cst_80 : f32 to vector<8x1xf32>
    %182 = arith.addf %180, %181 : vector<8x1xf32>
    %183 = math.rsqrt %182 : vector<8x1xf32>
    %184 = vector.broadcast %183 : vector<8x1xf32> to vector<8x32xf32>
    %185 = arith.mulf %175, %184 : vector<8x32xf32>
    %186 = vector.broadcast %167 : vector<1x32xf32> to vector<8x32xf32>
    %187 = arith.mulf %185, %186 : vector<8x32xf32>
    %188 = vector.broadcast %169 : vector<1x32xf32> to vector<8x32xf32>
    %189 = arith.addf %187, %188 : vector<8x32xf32>
    %c0_81 = arith.constant 0 : index
    %c0_82 = arith.constant 0 : index
    %190 = vector.load %arg23[%c0_81, %c0_82] : memref<8x32xf32, #tpu.memory_space<vmem>>, vector<8x32xf32>
    tpu.vector_store %arg23[%c0_81, %c0_82], %189 {strides = array<i32>} : memref<8x32xf32, #tpu.memory_space<vmem>>, vector<8x32xf32>,
    %c1_i32 = arith.constant 1 : i32
    %191 = arith.cmpi eq, %arg1, %c1_i32 : i32
    %192 = arith.extui %191 : i1 to i32
    %c0_i32_83 = arith.constant 0 : i32
    %193 = arith.cmpi ne, %192, %c0_i32_83 : i32
    scf.if %193 {
      %194 = vector.extract_strided_slice %189 {offsets = [0, 0], sizes = [1, 32], strides = [1, 1]} : vector<8x32xf32> to vector<1x32xf32>
      %195 = arith.truncf %194 : vector<1x32xf32> to vector<1x32xbf16>
      %c0_84 = arith.constant 0 : index
      %c0_85 = arith.constant 0 : index
      %196 = vector.load %arg20[%c0_84, %c0_85] : memref<32x16xbf16, #tpu.memory_space<vmem>>, vector<32x16xbf16>
      %cst_86 = arith.constant dense<0.000000e+00> : vector<1x16xf32>
      %197 = tpu.matmul %195, %196, %cst_86 {dimension_numbers = #tpu.dot_dimension_numbers<[1], [0], [0], [1], [0, 0, 1, 1], [], []>} : vector<1x32xbf16>, vector<32x16xbf16>, vector<1x16xf32> -> vector<1x16xf32>
      %c0_87 = arith.constant 0 : index
      %c0_88 = arith.constant 0 : index
      %198 = vector.load %arg21[%c0_87, %c0_88] : memref<1x16xf32, #tpu.memory_space<vmem>>, vector<1x16xf32>
      %199 = arith.addf %197, %198 : vector<1x16xf32>
      %c0_89 = arith.constant 0 : index
      %c0_90 = arith.constant 0 : index
      %c0_91 = arith.constant 0 : index
      %200 = vector.load %arg22[%c0_89, %c0_90, %c0_91] : memref<1x1x16xf32, #tpu.memory_space<vmem>>, vector<1x1x16xf32>
      %201 = vector.shape_cast %200 : vector<1x1x16xf32> to vector<1x16xf32>
      %202 = vector.shape_cast %199 : vector<1x16xf32> to vector<1x1x16xf32>
      tpu.vector_store %arg22[%c0_89, %c0_90, %c0_91], %202 {strides = array<i32>} : memref<1x1x16xf32, #tpu.memory_space<vmem>>, vector<1x1x16xf32>,
    } else {
    }
    return
  }
  func.func @transform_0(%arg0: i32, %arg1: i32) -> (i32, i32, i32) {
    %c0_i32 = arith.constant 0 : i32
    %c0_i32_0 = arith.constant 0 : i32
    %c0_i32_1 = arith.constant 0 : i32
    return %arg0, %c0_i32, %c0_i32_0 : i32, i32, i32
  }
  func.func @transform_1(%arg0: i32, %arg1: i32) -> (i32, i32) {
    %c0_i32 = arith.constant 0 : i32
    %c0_i32_0 = arith.constant 0 : i32
    %c0_i32_1 = arith.constant 0 : i32
    return %c0_i32, %c0_i32_0 : i32, i32
  }
  func.func @transform_2(%arg0: i32, %arg1: i32) -> (i32, i32) {
    %c0_i32 = arith.constant 0 : i32
    %c0_i32_0 = arith.constant 0 : i32
    %c0_i32_1 = arith.constant 0 : i32
    return %c0_i32, %c0_i32_0 : i32, i32
  }
  func.func @transform_3(%arg0: i32, %arg1: i32) -> (i32, i32, i32) {
    %c0_i32 = arith.constant 0 : i32
    %c0_i32_0 = arith.constant 0 : i32
    %c0_i32_1 = arith.constant 0 : i32
    return %arg0, %c0_i32, %c0_i32_0 : i32, i32, i32
  }
  func.func @transform_4(%arg0: i32, %arg1: i32) -> (i32, i32) {
    %c0_i32 = arith.constant 0 : i32
    %c0_i32_0 = arith.constant 0 : i32
    %c0_i32_1 = arith.constant 0 : i32
    return %c0_i32, %c0_i32_0 : i32, i32
  }
  func.func @transform_5(%arg0: i32, %arg1: i32) -> (i32, i32) {
    %c0_i32 = arith.constant 0 : i32
    %c0_i32_0 = arith.constant 0 : i32
    %c0_i32_1 = arith.constant 0 : i32
    return %c0_i32, %c0_i32_0 : i32, i32
  }
  func.func @transform_6(%arg0: i32, %arg1: i32) -> (i32, i32, i32) {
    %c0_i32 = arith.constant 0 : i32
    %c0_i32_0 = arith.constant 0 : i32
    %c0_i32_1 = arith.constant 0 : i32
    return %arg1, %c0_i32, %c0_i32_0 : i32, i32, i32
  }
  func.func @transform_7(%arg0: i32, %arg1: i32) -> (i32, i32, i32) {
    %c0_i32 = arith.constant 0 : i32
    %c0_i32_0 = arith.constant 0 : i32
    %c0_i32_1 = arith.constant 0 : i32
    return %arg1, %c0_i32, %c0_i32_0 : i32, i32, i32
  }
  func.func @transform_8(%arg0: i32, %arg1: i32) -> (i32, i32, i32) {
    %c0_i32 = arith.constant 0 : i32
    %c0_i32_0 = arith.constant 0 : i32
    %c0_i32_1 = arith.constant 0 : i32
    return %arg1, %c0_i32, %c0_i32_0 : i32, i32, i32
  }
  func.func @transform_9(%arg0: i32, %arg1: i32) -> (i32, i32, i32) {
    %c0_i32 = arith.constant 0 : i32
    %c0_i32_0 = arith.constant 0 : i32
    %c0_i32_1 = arith.constant 0 : i32
    return %arg1, %c0_i32, %c0_i32_0 : i32, i32, i32
  }
  func.func @transform_10(%arg0: i32, %arg1: i32) -> (i32, i32, i32) {
    %c0_i32 = arith.constant 0 : i32
    %c0_i32_0 = arith.constant 0 : i32
    %c0_i32_1 = arith.constant 0 : i32
    return %arg1, %c0_i32, %c0_i32_0 : i32, i32, i32
  }
  func.func @transform_11(%arg0: i32, %arg1: i32) -> (i32, i32, i32) {
    %c0_i32 = arith.constant 0 : i32
    %c0_i32_0 = arith.constant 0 : i32
    %c0_i32_1 = arith.constant 0 : i32
    return %arg1, %c0_i32, %c0_i32_0 : i32, i32, i32
  }
  func.func @transform_12(%arg0: i32, %arg1: i32) -> (i32, i32, i32) {
    %c0_i32 = arith.constant 0 : i32
    %c0_i32_0 = arith.constant 0 : i32
    %c0_i32_1 = arith.constant 0 : i32
    return %arg1, %c0_i32, %c0_i32_0 : i32, i32, i32
  }
  func.func @transform_13(%arg0: i32, %arg1: i32) -> (i32, i32, i32) {
    %c0_i32 = arith.constant 0 : i32
    %c0_i32_0 = arith.constant 0 : i32
    %c0_i32_1 = arith.constant 0 : i32
    return %arg1, %c0_i32, %c0_i32_0 : i32, i32, i32
  }
  func.func @transform_14(%arg0: i32, %arg1: i32) -> (i32, i32, i32) {
    %c0_i32 = arith.constant 0 : i32
    %c0_i32_0 = arith.constant 0 : i32
    %c0_i32_1 = arith.constant 0 : i32
    return %arg1, %c0_i32, %c0_i32_0 : i32, i32, i32
  }
  func.func @transform_15(%arg0: i32, %arg1: i32) -> (i32, i32, i32) {
    %c0_i32 = arith.constant 0 : i32
    %c0_i32_0 = arith.constant 0 : i32
    %c0_i32_1 = arith.constant 0 : i32
    return %arg1, %c0_i32, %c0_i32_0 : i32, i32, i32
  }
  func.func @transform_16(%arg0: i32, %arg1: i32) -> (i32, i32, i32) {
    %c0_i32 = arith.constant 0 : i32
    %c0_i32_0 = arith.constant 0 : i32
    %c0_i32_1 = arith.constant 0 : i32
    return %arg1, %c0_i32, %c0_i32_0 : i32, i32, i32
  }
  func.func @transform_17(%arg0: i32, %arg1: i32) -> (i32, i32, i32) {
    %c0_i32 = arith.constant 0 : i32
    %c0_i32_0 = arith.constant 0 : i32
    %c0_i32_1 = arith.constant 0 : i32
    return %arg1, %c0_i32, %c0_i32_0 : i32, i32, i32
  }
  func.func @transform_18(%arg0: i32, %arg1: i32) -> (i32, i32) {
    %c0_i32 = arith.constant 0 : i32
    %c0_i32_0 = arith.constant 0 : i32
    %c0_i32_1 = arith.constant 0 : i32
    return %c0_i32, %c0_i32_0 : i32, i32
  }
  func.func @transform_19(%arg0: i32, %arg1: i32) -> (i32, i32) {
    %c0_i32 = arith.constant 0 : i32
    %c0_i32_0 = arith.constant 0 : i32
    %c0_i32_1 = arith.constant 0 : i32
    return %c0_i32, %c0_i32_0 : i32, i32
  }
  func.func @transform_20(%arg0: i32, %arg1: i32) -> (i32, i32, i32) {
    %c0_i32 = arith.constant 0 : i32
    %c0_i32_0 = arith.constant 0 : i32
    %c0_i32_1 = arith.constant 0 : i32
    return %arg0, %c0_i32, %c0_i32_0 : i32, i32, i32
  }
}

</mosaic_0001>

<bundles_post_ra>
// kernel: text_encoder_forward.1
= control target key start
LH: loop header
LB: loop body
LE: loop exit
PB: predicated region body
PF: predicated region fallthrough
CT: control target
= control target key end

     0   :  { %s4880_s0 = inlined_call_operand.hbm [shape: f32[2,8,32], index: 0, kind: input, shape index: {}]   ;;  %s4881_s1 = inlined_call_operand.hbm [shape: f32[8,32], index: 1, kind: input, shape index: {}]   ;;  %s4882_s2 = inlined_call_operand.hbm [shape: f32[1,32], index: 2, kind: input, shape index: {}]   ;;  %s4883_s3 = inlined_call_operand.hbm [shape: f32[2,1,8], index: 3, kind: input, shape index: {}]   ;;  %s4884_s4 = inlined_call_operand.hbm [shape: f32[1,32], index: 4, kind: input, shape index: {}]   ;;  %s4885_s5 = inlined_call_operand.hbm [shape: f32[1,32], index: 5, kind: input, shape index: {}]   ;;  %s4886_s6 = inlined_call_operand.hbm [shape: bf16[2,32,96], index: 6, kind: input, shape index: {}]   ;;  %s4887_s7 = inlined_call_operand.hbm [shape: f32[2,1,96], index: 7, kind: input, shape index: {}]   ;;  %s4888_s8 = inlined_call_operand.hbm [shape: bf16[2,32,32], index: 8, kind: input, shape index: {}]   ;;  %s4889_s9 = inlined_call_operand.hbm [shape: f32[2,1,32], index: 9, kind: input, shape index: {}]   ;;  %s4890_s10 = inlined_call_operand.hbm [shape: f32[2,1,32], index: 10, kind: input, shape index: {}]   ;;  %s4891_s11 = inlined_call_operand.hbm [shape: f32[2,1,32], index: 11, kind: input, shape index: {}]   ;;  %s4892_s12 = inlined_call_operand.hbm [shape: bf16[2,32,64], index: 12, kind: input, shape index: {}]   ;;  %s4893_s13 = inlined_call_operand.hbm [shape: f32[2,1,64], index: 13, kind: input, shape index: {}]   ;;  %s4894_s14 = inlined_call_operand.hbm [shape: bf16[2,64,32], index: 14, kind: input, shape index: {}]   ;;  %s4895_s15 = inlined_call_operand.hbm [shape: f32[2,1,32], index: 15, kind: input, shape index: {}]   ;;  %s4896_s16 = inlined_call_operand.hbm [shape: f32[2,1,32], index: 16, kind: input, shape index: {}]   ;;  %s4897_s17 = inlined_call_operand.hbm [shape: f32[2,1,32], index: 17, kind: input, shape index: {}]   ;;  %s4898_s18 = inlined_call_operand.hbm [shape: bf16[32,16], index: 18, kind: input, shape index: {}]   ;;  %s4899_s19 = inlined_call_operand.hbm [shape: f32[1,16], index: 19, kind: input, shape index: {}]   ;;  %s4900_s20 = inlined_call_operand.hbm [shape: f32[2,1,16], index: 20, kind: output, shape index: {}]  }
   0x1   :  { %4946 = sst [smem:[#allocation66_spill]] %s4880_s0 }
   0x2   :  { %4947 = sst [smem:[#allocation67_spill]] %s4881_s1 }
   0x3   :  { %4948 = sst [smem:[#allocation68_spill]] %s4882_s2 }
   0x4   :  { %4949 = sst [smem:[#allocation69_spill]] %s4883_s3 }
   0x5   :  { %4950 = sst [smem:[#allocation70_spill]] %s4884_s4 }
   0x6   :  { %4951 = sst [smem:[#allocation71_spill]] %s4885_s5 }
   0x7   :  { %4952 = sst [smem:[#allocation72_spill]] %s4886_s6 }
   0x8   :  { %4953 = sst [smem:[#allocation73_spill]] %s4887_s7 }
   0x9   :  { %4954 = sst [smem:[#allocation74_spill]] %s4888_s8 }
   0xa   :  { %4955 = sst [smem:[#allocation75_spill]] %s4889_s9 }
   0xb   :  { %4956 = sst [smem:[#allocation76_spill]] %s4891_s11 }
   0xc   :  { %4957 = sst [smem:[#allocation77_spill]] %s4892_s12 }
   0xd   :  { %4958 = sst [smem:[#allocation78_spill]] %s4893_s13 }
   0xe   :  { %4959 = sst [smem:[#allocation79_spill]] %s4894_s14 }
   0xf   :  { %4960 = sst [smem:[#allocation80_spill]] %s4895_s15 }
  0x10   :  { %4961 = sst [smem:[#allocation81_spill]] %s4896_s16 }
  0x11   :  { %4962 = sst [smem:[#allocation82_spill]] %s4897_s17 }
  0x12   :  { %4963 = sst [smem:[#allocation83_spill]] %s4900_s20 }
  0x13   :  { %25 = vsyncpa [#allocation5], 0 }
  0x14   :  { %27 = vsyncpa [#allocation5 + $0x1], 0 }
  0x15   :  { %28 = vsyncpa [#allocation8], 0 }
  0x16   :  { %29 = vsyncpa [#allocation11], 0 }
  0x17   :  { %31 = vsyncpa [#allocation11 + $0x1], 0 }
  0x18   :  { %32 = vsyncpa [#allocation14], 0 }
  0x19   :  { %33 = vsyncpa [#allocation29], 0 }
  0x1a   :  { %34 = vsyncpa [#allocation6], 0 }
  0x1b   :  { %36 = vsyncpa [#allocation6 + $0x1], 0  ;;  %s3850_s1 = smov 0   ;;  %s3852_s22 = smov 0  }
  0x1c   :  { %s3854_s23 = smov 0   ;;  %s3856_s24 = smov 0  }
  0x1d   :  { %s3858_s2 = smov 0   ;;  %s3860_s25 = smov 0  }
  0x1e   :  { %s3862_s3 = smov 0   ;;  %s3864_s26 = smov 0  }
  0x1f   :  { %s3866_s27 = smov 0   ;;  %s3868_s28 = smov 0  }
  0x20   :  { %s3870_s4 = smov 0  }
  0x21 LB: > { %4964 = sst [smem:[#allocation51_spill]] %s3664_s22  ;;  %s3906_s29 = sadd.s32 4294967295, %s3700_s4   ;;  %s3700_s4 = sphi %s3870_s4, %s42_s4   ;;  %s3696_s28 = sphi %s3868_s28, %s5065_s28   ;;  %s3692_s27 = sphi %s3866_s27, %s5064_s27   ;;  %s3688_s26 = sphi %s3864_s26, %s5063_s26   ;;  %s3684_s3 = sphi %s3862_s3, %s5062_s3   ;;  %s3680_s25 = sphi %s3860_s25, %s5061_s25   ;;  %s3676_s2 = sphi %s3858_s2, %s5060_s2   ;;  %s3672_s24 = sphi %s3856_s24, %s5059_s24   ;;  %s3668_s23 = sphi %s3854_s23, %s5058_s23   ;;  %s3664_s22 = sphi %s3852_s22, %s5057_s22   ;;  %s3660_s1 = sphi %s3850_s1, %s5051_s1  }
  0x22   : > { %4965 = sst [smem:[#allocation52_spill]] %s3672_s24  ;;  %s2489_s30 = sadd.s32 4294967294, %s3700_s4  }
  0x23   : > { %4966 = sst [smem:[#allocation53_spill]] %s3676_s2  ;;  %s51_s0 = sadd.s32 1, %s3692_s27 }
  0x24   : > { %4967 = sst [smem:[#allocation54_spill]] %s3684_s3  ;;  %s54_s21 = sadd.s32 1, %s3696_s28 }
  0x25   : > { %4968 = sst [smem:[#allocation55_spill]] %s3688_s26  ;;  %p52_p0 = scmp.ge.s32.totalorder %s51_s0, 2 }
  0x26   : > { %4969 = sst [smem:[#allocation56_spill]] %s3906_s29  ;;  %s61_s20 = sadd.s32 1, %s3680_s25 }
  0x27   : > { %p4915_p1 = scmp.ne.s32.totalorder %s3680_s25, %s3676_s2  ;;  %p69_p2 = scmp.eq.s32.totalorder %s3700_s4, 0 }
  0x28   : > { %s5067_s0 = smov (%p52_p0, %s51_s0), 0  ;;  %s5069_s21 = smov (!%p52_p0, %s54_s21), %s3696_s28 }
  0x29   : > { %4970 = sst [smem:[#allocation57_spill]] %s5067_s0  ;;  %p3923_p3 = por %p69_p2, %p4915_p1 }
  0x2a   : > { %p4914_p4 = scmp.ne.s32.totalorder %s3676_s2, %s3672_s24  ;;  %p56_p5 = scmp.ge.s32.totalorder %s5069_s21, 2 }
  0x2b   : > { %s4971_s26 = scalar_select %p3923_p3, 1, 0 }
  0x2c   : > { %p4929_p6 = scmp.eq.s32.totalorder %s3906_s29, 0  ;;  %s194_s3 = ssub.s32 %s3692_s27, %s5067_s0 }
  0x2d   : > { %s197_s17 = sadd.s32 1, %s3668_s23  ;;  %s5071_s21 = smov (%p56_p5, %s5069_s21), 0 }
  0x2e   : > { %4972 = sst [smem:[#allocation58_spill]] %s5071_s21  ;;  %p3940_p7 = por %p4929_p6, %p4914_p4 }
  0x2f   : > { %p195_p8 = scmp.eq.s32.totalorder %s194_s3, 0  ;;  %s58_s15 = ssub.s32 %s3696_s28, %s5071_s21 }
  0x30   : > { %s4973_s16 = scalar_select %p3940_p7, 1, 0 }
  0x31   : > { %p204_p9 = scmp.ne.s32.totalorder %s3668_s23, %s3664_s22  ;;  %p59_p10 = scmp.eq.s32.totalorder %s58_s15, 0 }
  0x32   : > { %4974 = sst [smem:[#allocation59_spill]] %s4973_s16  ;;  %p210_p11 = scmp.ne.s32.totalorder %s3664_s22, %s3660_s1 }
  0x33   : > { %s3951_s0 = scalar_select %p195_p8, %s3668_s23, %s197_s17  }
  0x34   : > { %s3954_s14 = scalar_select %p59_p10, %s3680_s25, %s61_s20  }
  0x35   : > { %4975 = sst [smem:[#allocation60_spill]] %s3951_s0  ;;  %p3958_p12 = por %p204_p9, %p69_p2 }
  0x36   : > { %4976 = sst [smem:[#allocation61_spill]] %s3954_s14  ;;  %p3964_p13 = por %p210_p11, %p4929_p6 }
  0x37   : > { %s4977_s13 = scalar_select %p3958_p12, 1, 0 }
  0x38   : > { %s4978_s12 = scalar_select %p3964_p13, 1, 0 }
  0x39   : > { %p562_p0 = scmp.eq.s32.totalorder %s3906_s29, 3  ;;  %p568_p5 = scmp.eq.s32.totalorder %s2489_s30, 3 }
  0x3a   : > { %4979 = sst [smem:[#allocation62_spill]] %s4978_s12  ;;  %p2490_p4 = scmp.ge.s32.totalorder %s3700_s4, 1 }
  0x3b   : > { %p575_p1 = scmp.lt.s32.totalorder %s3700_s4, 5  ;;  %p4980_p7 = scmp.ne.s32.totalorder %s3680_s25, %s3676_s2 }
  0x3c   : > { %p4983_p10 = scmp.ne.s32.totalorder %s3676_s2, %s3672_s24  ;;  %s3702_s1 = smov [#allocation7]  }
  0x3d   : > { %p3974_p8 = por %p562_p0, %p4980_p7  ;;  %p3985_p2 = pnand %p2490_p4, %p575_p1 }
  0x3e   : > { %p3981_p3 = por %p568_p5, %p4983_p10  ;;  %s588_s3 = sshll.u32 %s3702_s1, 4  ;;  %s589_s3 = int_to_ptr.vmem [resolvable:$true] %s588_s3 }
  0x3f   : > { %s4981_s15 = scalar_select %p3974_p8, 1, 0 }
  0x40   : > { %s4984_s17 = scalar_select %p3981_p3, 1, 0 }
  0x41   : > { %4982 = sst [smem:[#allocation63_spill]] %s4981_s15  ;;  %p2758_p9 = pneg %p3985_p2 }
  0x42   : > { %4985 = sst [smem:[#allocation64_spill]] %s4984_s17  ;;  %s3703_s30 = smov [#allocation13]  }
  0x43   : > { %s4986_s20 = scalar_select %p3985_p2, 1, 0 }
  0x44   : > { %s621_s21 = sshll.u32 %s3703_s30, 4  ;;  %p3993_p7 = pnand %p2758_p9, %p4929_p6  ;;  %s3997_s21 = int_to_ptr.vmem [resolvable:$true] %s621_s21 }
  0x45   : > { %4987 = sst [smem:[#allocation65_spill]] %s4986_s20  ;;  %s3704_s0 = smov [#allocation9]  }
  0x46   : > { %s3999_s17 = sshll.u32 %s3704_s0, 4  ;;  %s4989_s12 = sld [smem:[#allocation67_spill]]  ;;  %s600_s17 = int_to_ptr.vmem [resolvable:$true] %s3999_s17 }
  0x47   : > { %p4009_p4 = pneg %p3993_p7 }
  0x4c   : > { %s2946_s22 = scalar_lea.hbm %s4989_s12, 128 }
  0x4d   : > { %p2947_p1 = scmp.ne.s32.totalorder %s4989_s12, %s2946_s22  ;;  %p2953_p5 = scmp.lt.u32.totalorder %s2946_s22, %s4989_s12 }
  0x4f   : > { %p2949_p11 = pnand %p4009_p4, %p2947_p1 }
  0x51   : > { %p2950_p0 = pneg %p2949_p11 }
  0x53   : > { %p2955_p10 = pnand %p2953_p5, %p2950_p0 }
  0x55   : > { %2958 = shalt.err (!%p2955_p10)
}
  0x56   : > { %s2959_s24 = scalar_lea.vmem %s589_s3, 128  ;;  %p2967_p8 = scmp.lt.s32.totalorder %s589_s3, %s589_s3 }
  0x57   : > { %p2960_p9 = scmp.ne.s32.totalorder %s589_s3, %s2959_s24  ;;  %p2968_p13 = scmp.lt.s32.totalorder %s2959_s24, %s2959_s24 }
  0x59   : > { %p2962_p6 = pnand %p2960_p9, %p4009_p4  ;;  %p2969_p2 = por %p2968_p13, %p2967_p8 }
  0x5b   : > { %p2963_p3 = pneg %p2962_p6 }
  0x5d   : > { %p2970_p12 = pnand %p2969_p2, %p2963_p3 }
  0x5f   : > { %2973 = shalt.err (!%p2970_p12)
}
  0x60   : > { %2761 = dma.hbm_to_vmem [thread:$0]  (!%p3993_p7), %s4989_s12, 128, %s589_s3, [#allocation8]  }
  0x61   : > { %s4991_s5 = sld [smem:[#allocation71_spill]] }
  0x67   : > { %s2974_s1 = scalar_lea.hbm %s4991_s5, 16 }
  0x68   : > { %p2975_p6 = scmp.ne.s32.totalorder %s4991_s5, %s2974_s1  ;;  %p2981_p3 = scmp.lt.u32.totalorder %s2974_s1, %s4991_s5 }
  0x6a   : > { %p2977_p1 = pnand %p2975_p6, %p4009_p4 }
  0x6c   : > { %p2978_p13 = pneg %p2977_p1 }
  0x6e   : > { %p2983_p12 = pnand %p2981_p3, %p2978_p13 }
  0x70   : > { %2986 = shalt.err (!%p2983_p12)
}
  0x71   : > { %s2987_s3 = scalar_lea.vmem %s3997_s21, 16  ;;  %s2994_s29 = scalar_lea.vmem %s3997_s21, 32 }
  0x72   : > { %p2988_p8 = scmp.ne.s32.totalorder %s3997_s21, %s2987_s3  ;;  %p2995_p0 = scmp.lt.s32.totalorder %s3997_s21, %s3997_s21 }
  0x73   : > { %p2996_p5 = scmp.lt.s32.totalorder %s2994_s29, %s2987_s3 }
  0x74   : > { %p2990_p2 = pnand %p2988_p8, %p4009_p4 }
  0x75   : > { %p2997_p10 = por %p2996_p5, %p2995_p0 }
  0x76   : > { %p2991_p11 = pneg %p2990_p2 }
  0x78   : > { %p2998_p9 = pnand %p2997_p10, %p2991_p11 }
  0x7a   : > { %3001 = shalt.err (!%p2998_p9)
}
  0x7b   : > { %2770 = dma.hbm_to_vmem [thread:$0]  (!%p3993_p7), %s4991_s5, 16, %s3997_s21, [#allocation14]  }
  0x7c   : > { %s3705_s15 = smov [#allocation12]   ;;  %s4992_s0 = sld [smem:[#allocation68_spill]] }
  0x7d   : > { %s610_s22 = sshll.u32 %s3705_s15, 4  ;;  %s611_s22 = int_to_ptr.vmem [resolvable:$true] %s610_s22 }
  0x82   : > { %s3002_s24 = scalar_lea.hbm %s4992_s0, 16 }
  0x83   : > { %p3003_p6 = scmp.ne.s32.totalorder %s4992_s0, %s3002_s24  ;;  %p3009_p3 = scmp.lt.u32.totalorder %s3002_s24, %s4992_s0 }
  0x85   : > { %p3005_p1 = pnand %p3003_p6, %p4009_p4 }
  0x87   : > { %p3006_p13 = pneg %p3005_p1 }
  0x89   : > { %p3011_p12 = pnand %p3009_p3, %p3006_p13 }
  0x8b   : > { %3014 = shalt.err (!%p3011_p12)
}
  0x8c   : > { %s3015_s21 = scalar_lea.vmem %s600_s17, 16  ;;  %s3022_s20 = scalar_lea.vmem %s600_s17, 32 }
  0x8d   : > { %p3016_p8 = scmp.ne.s32.totalorder %s600_s17, %s3015_s21  ;;  %p3023_p0 = scmp.lt.s32.totalorder %s600_s17, %s600_s17 }
  0x8e   : > { %p3024_p5 = scmp.lt.s32.totalorder %s3022_s20, %s3015_s21 }
  0x8f   : > { %p3018_p2 = pnand %p3016_p8, %p4009_p4 }
  0x90   : > { %p3025_p10 = por %p3024_p5, %p3023_p0 }
  0x91   : > { %p3019_p11 = pneg %p3018_p2 }
  0x93   : > { %p3026_p9 = pnand %p3025_p10, %p3019_p11 }
  0x95   : > { %3029 = shalt.err (!%p3026_p9)
}
  0x96   : > { %2764 = dma.hbm_to_vmem [thread:$0]  (!%p3993_p7), %s4992_s0, 16, %s600_s17, [#allocation8]  }
  0x97   : > { %s4993_s2 = sld [smem:[#allocation70_spill]] }
  0x9d   : > { %s4994_s29 = smov %s4993_s2  ;;  %s3030_s1 = scalar_lea.hbm %s4993_s2, 16 }
  0x9e   : > { %p3031_p6 = scmp.ne.s32.totalorder %s4994_s29, %s3030_s1  ;;  %p3037_p3 = scmp.lt.u32.totalorder %s3030_s1, %s4994_s29 }
  0xa0   : > { %p3033_p1 = pnand %p3031_p6, %p4009_p4 }
  0xa2   : > { %p3034_p13 = pneg %p3033_p1 }
  0xa4   : > { %p3039_p12 = pnand %p3037_p3, %p3034_p13 }
  0xa6   : > { %3042 = shalt.err (!%p3039_p12)
}
  0xa7   : > { %s3043_s16 = scalar_lea.vmem %s611_s22, 16  ;;  %s3050_s17 = scalar_lea.vmem %s611_s22, 32 }
  0xa8   : > { %p3044_p8 = scmp.ne.s32.totalorder %s611_s22, %s3043_s16  ;;  %p3051_p0 = scmp.lt.s32.totalorder %s611_s22, %s611_s22 }
  0xa9   : > { %p3052_p5 = scmp.lt.s32.totalorder %s3050_s17, %s3043_s16 }
  0xaa   : > { %p3046_p2 = pnand %p3044_p8, %p4009_p4 }
  0xab   : > { %p3053_p10 = por %p3052_p5, %p3051_p0 }
  0xac   : > { %p3047_p11 = pneg %p3046_p2 }
  0xae   : > { %p3054_p9 = pnand %p3053_p10, %p3047_p11 }
  0xb0   : > { %3057 = shalt.err (!%p3054_p9)
}
  0xb1   : > { %2767 = dma.hbm_to_vmem [thread:$0]  (!%p3993_p7), %s4994_s29, 16, %s611_s22, [#allocation11]  }
  0xb2   : > { %s3706_s12 = smov [#allocation27]   ;;  %s3058_s3 = scalar_lea.hbm %s4898_s18, 256 }
  0xb3   : > { %s631_s2 = sshll.u32 %s3706_s12, 4  ;;  %p3059_p6 = scmp.ne.s32.totalorder %s4898_s18, %s3058_s3  ;;  %s632_s2 = int_to_ptr.vmem [resolvable:$true] %s631_s2 }
  0xb4   : > { %p3065_p3 = scmp.lt.u32.totalorder %s3058_s3, %s4898_s18 }
  0xb5   : > { %p3061_p1 = pnand %p3059_p6, %p4009_p4 }
  0xb7   : > { %p3062_p13 = pneg %p3061_p1 }
  0xb9   : > { %p3067_p12 = pnand %p3065_p3, %p3062_p13 }
  0xbb   : > { %3070 = shalt.err (!%p3067_p12)
}
  0xbc   : > { %s3071_s22 = scalar_lea.vmem %s632_s2, 256  ;;  %p3079_p0 = scmp.lt.s32.totalorder %s632_s2, %s632_s2 }
  0xbd   : > { %p3072_p8 = scmp.ne.s32.totalorder %s632_s2, %s3071_s22  ;;  %p3080_p5 = scmp.lt.s32.totalorder %s3071_s22, %s3071_s22 }
  0xbf   : > { %p3074_p2 = pnand %p3072_p8, %p4009_p4  ;;  %p3081_p10 = por %p3080_p5, %p3079_p0 }
  0xc1   : > { %p3075_p11 = pneg %p3074_p2 }
  0xc3   : > { %p3082_p9 = pnand %p3081_p10, %p3075_p11 }
  0xc5   : > { %3085 = shalt.err (!%p3082_p9)
}
  0xc6   : > { %s3707_s15 = smov 64   ;;  %s3708_s11 = smov 4  }
  0xc7   : > { %2773 = dma.hbm_to_vmem [thread:$0]  (!%p3993_p7), %s4898_s18, 256, %s632_s2, [#allocation14], %s3707_s15, %s3707_s15, %s3708_s11  }
  0xc8   : > { %s3709_s24 = smov [#allocation28]   ;;  %s3086_s16 = scalar_lea.hbm %s4899_s19, 16 }
  0xc9   : > { %s645_s3 = sshll.u32 %s3709_s24, 4  ;;  %p3087_p6 = scmp.ne.s32.totalorder %s4899_s19, %s3086_s16  ;;  %s646_s3 = int_to_ptr.vmem [resolvable:$true] %s645_s3 }
  0xca   : > { %p3093_p3 = scmp.lt.u32.totalorder %s3086_s16, %s4899_s19 }
  0xcb   : > { %p3089_p1 = pnand %p3087_p6, %p4009_p4 }
  0xcd   : > { %p3090_p13 = pneg %p3089_p1 }
  0xcf   : > { %p3095_p12 = pnand %p3093_p3, %p3090_p13 }
  0xd1   : > { %3098 = shalt.err (!%p3095_p12)
}
  0xd2   : > { %s3099_s2 = scalar_lea.vmem %s646_s3, 16  ;;  %s3106_s15 = scalar_lea.vmem %s646_s3, 32 }
  0xd3   : > { %p3100_p8 = scmp.ne.s32.totalorder %s646_s3, %s3099_s2  ;;  %p3107_p0 = scmp.lt.s32.totalorder %s646_s3, %s646_s3 }
  0xd4   : > { %p3108_p5 = scmp.lt.s32.totalorder %s3106_s15, %s3099_s2 }
  0xd5   : > { %p3102_p2 = pnand %p3100_p8, %p4009_p4 }
  0xd6   : > { %p3109_p10 = por %p3108_p5, %p3107_p0 }
  0xd7   : > { %p3103_p11 = pneg %p3102_p2 }
  0xd9   : > { %p3110_p9 = pnand %p3109_p10, %p3103_p11 }
  0xdb   : > { %3113 = shalt.err (!%p3110_p9)
}
  0xdc   : > { %2776 = dma.hbm_to_vmem [thread:$0]  (!%p3993_p7), %s4899_s19, 16, %s646_s3, [#allocation29]  }
  0xdd   : > { %p2497_p6 = scmp.ge.s32.totalorder %s3700_s4, 4 }
  0xde   : > { %s656_s5 = sand.u32 (!%p2497_p6), 1, %s3700_s4   ;;  %s658_s30 = sand.u32 (!%p2497_p6), 1, %s3680_s25  }
  0xdf   : > { %652 = sbr.rel (%p2497_p6) target bundleno = 616 (0x268), region = 40  ;;  %s2498_s0 = sshll.u32 (!%p2497_p6), %s658_s30, 3 }
  0xe0   : > { %s2499_s1 = sshll.u32 (!%p2497_p6), %s3696_s28, 7  ;;  %s4995_s21 = sld [smem:[#allocation66_spill]] (!%p2497_p6) }
  0xe1   : > { %s660_s3 = scalar_lea.vmem (!%p2497_p6), [#allocation4], %s2498_s0  ;;  %s4135_s17 = scalar_lea.sflag (!%p2497_p6), [#allocation5], %s656_s5 }
  0xe2   : > { %s667_s16 = sshll.u32 (!%p2497_p6), %s660_s3, 4  ;;  %p4996_p4 = scmp.ne.s32.totalorder (!%p2497_p6), %s4971_s26, 0  ;;  %s668_s16 = int_to_ptr.vmem [resolvable:$true] %s667_s16 }
  0xe6   : > { %s4131_s20 = scalar_lea.hbm %s4995_s21, %s2499_s1  ;;  %s3118_s11 = scalar_lea.hbm %s4995_s21, 256 }
  0xe7   : > { %s3114_s22 = scalar_lea.hbm %s4131_s20, 128  ;;  %p3119_p3 = scmp.lt.u32.totalorder %s4131_s20, %s4995_s21 }
  0xe8   : > { %p3115_p7 = scmp.ne.s32.totalorder %s4131_s20, %s3114_s22  ;;  %p3120_p12 = scmp.lt.u32.totalorder %s3118_s11, %s3114_s22 }
  0xe9   : > { %p3122_p2 = scmp.lt.u32.totalorder %s3114_s22, %s4131_s20 }
  0xea   : > { %p3116_p1 = pnand %p3115_p7, %p4996_p4  ;;  %p3121_p8 = por %p3120_p12, %p3119_p3 }
  0xec   : > { %p3117_p13 = pneg %p3116_p1  ;;  %p3123_p11 = por %p3122_p2, %p3121_p8 }
  0xee   : > { %p3124_p0 = pnand %p3123_p11, %p3117_p13 }
  0xf0   : > { %3127 = shalt.err (!%p3124_p0)
}
  0xf1   : > { %s3128_s0 = scalar_lea.vmem %s668_s16, 128  ;;  %s3710_s24 = smov [#allocation4]  }
  0xf2   : > { %p3129_p5 = scmp.ne.s32.totalorder %s668_s16, %s3128_s0  ;;  %s3132_s14 = sshll.u32 %s3710_s24, 4  ;;  %s3133_s14 = int_to_ptr.vmem [resolvable:$false] %s3132_s14 }
  0xf3   : > { %s3134_s3 = scalar_lea.vmem %s3133_s14, 256  ;;  %p3135_p6 = scmp.lt.s32.totalorder %s668_s16, %s3133_s14 }
  0xf4   : > { %p3130_p10 = pnand %p3129_p5, %p4996_p4  ;;  %p3136_p7 = scmp.lt.s32.totalorder %s3134_s3, %s3128_s0 }
  0xf6   : > { %p3131_p9 = pneg %p3130_p10  ;;  %p3137_p1 = por %p3136_p7, %p3135_p6 }
  0xf8   : > { %p3138_p3 = pnand %p3137_p1, %p3131_p9 }
  0xfa   : > { %3141 = shalt.err (!%p3138_p3)
}
  0xfb   : > { %2716 = dma.hbm_to_vmem [thread:$0]  (%p4996_p4), %s4131_s20, 128, %s668_s16, %s4135_s17  }
  0xfc   : > { %s2500_s22 = sshll.u32 %s3696_s28, 4  ;;  %s4997_s11 = sld [smem:[#allocation69_spill]] }
  0xfd   : > { %s677_s1 = scalar_lea.vmem [#allocation10], %s658_s30  ;;  %s4166_s24 = sand.u32 1, %s3668_s23  }
  0xfe   : > { %s684_s0 = sshll.u32 %s677_s1, 4  ;;  %s4170_s14 = scalar_lea.sflag [#allocation11], %s656_s5  ;;  %s4163_s0 = int_to_ptr.vmem [resolvable:$true] %s684_s0 }
 0x102   : > { %s4159_s12 = scalar_lea.hbm %s4997_s11, %s2500_s22  ;;  %s3146_s22 = scalar_lea.hbm %s4997_s11, 32 }
 0x103   : > { %s3142_s20 = scalar_lea.hbm %s4159_s12, 16  ;;  %p3147_p2 = scmp.lt.u32.totalorder %s4159_s12, %s4997_s11 }
 0x104   : > { %p3143_p13 = scmp.ne.s32.totalorder %s4159_s12, %s3142_s20  ;;  %p3148_p11 = scmp.lt.u32.totalorder %s3146_s22, %s3142_s20 }
 0x105   : > { %p3150_p5 = scmp.lt.u32.totalorder %s3142_s20, %s4159_s12 }
 0x106   : > { %p3144_p12 = pnand %p3143_p13, %p4996_p4  ;;  %p3149_p0 = por %p3148_p11, %p3147_p2 }
 0x108   : > { %p3145_p8 = pneg %p3144_p12  ;;  %p3151_p10 = por %p3150_p5, %p3149_p0 }
 0x10a   : > { %p3152_p9 = pnand %p3151_p10, %p3145_p8 }
 0x10c   : > { %3155 = shalt.err (!%p3152_p9)
}
 0x10d   : > { %s3156_s5 = scalar_lea.vmem %s4163_s0, 16  ;;  %s3711_s30 = smov [#allocation10]  }
 0x10e   : > { %p3157_p6 = scmp.ne.s32.totalorder %s4163_s0, %s3156_s5  ;;  %s3160_s1 = sshll.u32 %s3711_s30, 4  ;;  %s3161_s1 = int_to_ptr.vmem [resolvable:$false] %s3160_s1 }
 0x10f   : > { %s3162_s16 = scalar_lea.vmem %s3161_s1, 32  ;;  %p3163_p3 = scmp.lt.s32.totalorder %s4163_s0, %s3161_s1 }
 0x110   : > { %p3158_p7 = pnand %p3157_p6, %p4996_p4  ;;  %p3164_p13 = scmp.lt.s32.totalorder %s3162_s16, %s3156_s5 }
 0x112   : > { %p3159_p1 = pneg %p3158_p7  ;;  %p3165_p12 = por %p3164_p13, %p3163_p3 }
 0x114   : > { %p3166_p2 = pnand %p3165_p12, %p3159_p1 }
 0x116   : > { %3169 = shalt.err (!%p3166_p2)
}
 0x117   : > { %2717 = dma.hbm_to_vmem [thread:$0]  (%p4996_p4), %s4159_s12, 16, %s4163_s0, %s4170_s14  }
 0x118   : > { %s4195_s20 = sshll.u32 %s4166_s24, 4  ;;  %s4198_s3 = sshll.u32 %s3692_s27, 8 }
 0x119   : > { %s4998_s6 = sld [smem:[#allocation72_spill]]  ;;  %s695_s26 = scalar_lea.vmem [#allocation15], %s4195_s20 }
 0x11a   : > { %s702_s5 = sshll.u32 %s695_s26, 4  ;;  %p4999_p8 = scmp.ne.s32.totalorder %s4977_s13, 0  ;;  %s4207_s5 = int_to_ptr.vmem [resolvable:$true] %s702_s5 }
 0x11f   : > { %s4204_s15 = scalar_lea.hbm %s4998_s6, %s4198_s3  ;;  %s3174_s1 = scalar_lea.hbm %s4998_s6, 512 }
 0x120   : > { %s3170_s12 = scalar_lea.hbm %s4204_s15, 256  ;;  %p3175_p5 = scmp.lt.u32.totalorder %s4204_s15, %s4998_s6 }
 0x121   : > { %p3171_p4 = scmp.ne.s32.totalorder %s4204_s15, %s3170_s12  ;;  %p3176_p10 = scmp.lt.u32.totalorder %s3174_s1, %s3170_s12 }
 0x122   : > { %p3178_p6 = scmp.lt.u32.totalorder %s3170_s12, %s4204_s15 }
 0x123   : > { %p3172_p11 = pnand %p3171_p4, %p4999_p8  ;;  %p3177_p9 = por %p3176_p10, %p3175_p5 }
 0x125   : > { %p3173_p0 = pneg %p3172_p11  ;;  %p3179_p7 = por %p3178_p6, %p3177_p9 }
 0x127   : > { %p3180_p1 = pnand %p3179_p7, %p3173_p0 }
 0x129   : > { %3183 = shalt.err (!%p3180_p1)
}
 0x12a   : > { %s3184_s2 = scalar_lea.vmem %s4207_s5, 256  ;;  %s3712_s26 = smov [#allocation15]  }
 0x12b   : > { %p3185_p3 = scmp.ne.s32.totalorder %s4207_s5, %s3184_s2  ;;  %s3188_s0 = sshll.u32 %s3712_s26, 4  ;;  %s3189_s0 = int_to_ptr.vmem [resolvable:$false] %s3188_s0 }
 0x12c   : > { %s3190_s30 = scalar_lea.vmem %s3189_s0, 512  ;;  %p3191_p2 = scmp.lt.s32.totalorder %s4207_s5, %s3189_s0 }
 0x12d   : > { %p3186_p13 = pnand %p3185_p3, %p4999_p8  ;;  %p3192_p4 = scmp.lt.s32.totalorder %s3190_s30, %s3184_s2 }
 0x12f   : > { %p3187_p12 = pneg %p3186_p13  ;;  %p3193_p11 = por %p3192_p4, %p3191_p2 }
 0x131   : > { %p3194_p5 = pnand %p3193_p11, %p3187_p12 }
 0x133   : > { %3197 = shalt.err (!%p3194_p5)
}
 0x134   : > { %s4940_s12 = smov 64   ;;  %s4942_s1 = smov 4  }
 0x135   : > { %2718 = dma.hbm_to_vmem [thread:$0]  (%p4999_p8), %s4204_s15, 256, %s4207_s5, %s4135_s17, %s4940_s12, %s4940_s12, %s4942_s1  }
 0x136   : > { %s4235_s16 = sshll.u32 %s3692_s27, 4  ;;  %s5000_s7 = sld [smem:[#allocation73_spill]] }
 0x137   : > { %s715_s0 = scalar_lea.vmem [#allocation16], %s4166_s24 }
 0x138   : > { %s722_s30 = sshll.u32 %s715_s0, 4  ;;  %s723_s30 = int_to_ptr.vmem [resolvable:$true] %s722_s30 }
 0x13c   : > { %s4241_s26 = scalar_lea.hbm %s5000_s7, %s4235_s16  ;;  %s3202_s12 = scalar_lea.hbm %s5000_s7, 32 }
 0x13d   : > { %s3198_s6 = scalar_lea.hbm %s4241_s26, 16  ;;  %p3203_p6 = scmp.lt.u32.totalorder %s4241_s26, %s5000_s7 }
 0x13e   : > { %p3199_p0 = scmp.ne.s32.totalorder %s4241_s26, %s3198_s6  ;;  %p3204_p7 = scmp.lt.u32.totalorder %s3202_s12, %s3198_s6 }
 0x13f   : > { %p3206_p3 = scmp.lt.u32.totalorder %s3198_s6, %s4241_s26 }
 0x140   : > { %p3200_p10 = pnand %p3199_p0, %p4999_p8  ;;  %p3205_p1 = por %p3204_p7, %p3203_p6 }
 0x142   : > { %p3201_p9 = pneg %p3200_p10  ;;  %p3207_p13 = por %p3206_p3, %p3205_p1 }
 0x144   : > { %p3208_p12 = pnand %p3207_p13, %p3201_p9 }
 0x146   : > { %3211 = shalt.err (!%p3208_p12)
}
 0x147   : > { %s3212_s2 = scalar_lea.vmem %s723_s30, 16  ;;  %s3715_s0 = smov [#allocation16]  }
 0x148   : > { %p3213_p2 = scmp.ne.s32.totalorder %s723_s30, %s3212_s2  ;;  %s3216_s11 = sshll.u32 %s3715_s0, 4  ;;  %s3217_s11 = int_to_ptr.vmem [resolvable:$false] %s3216_s11 }
 0x149   : > { %s3218_s15 = scalar_lea.vmem %s3217_s11, 32  ;;  %p3219_p5 = scmp.lt.s32.totalorder %s723_s30, %s3217_s11 }
 0x14a   : > { %p3214_p4 = pnand %p3213_p2, %p4999_p8  ;;  %p3220_p0 = scmp.lt.s32.totalorder %s3218_s15, %s3212_s2 }
 0x14c   : > { %p3215_p11 = pneg %p3214_p4  ;;  %p3221_p10 = por %p3220_p0, %p3219_p5 }
 0x14e   : > { %p3222_p6 = pnand %p3221_p10, %p3215_p11 }
 0x150   : > { %3225 = shalt.err (!%p3222_p6)
}
 0x151   : > { %2719 = dma.hbm_to_vmem [thread:$0]  (%p4999_p8), %s4241_s26, 16, %s723_s30, %s4170_s14  }
 0x152   : > { %s5001_s8 = sld [smem:[#allocation74_spill]]  ;;  %s733_s11 = scalar_lea.vmem [#allocation17], %s4195_s20 }
 0x153   : > { %s740_s5 = sshll.u32 %s733_s11, 4  ;;  %s4269_s5 = int_to_ptr.vmem [resolvable:$true] %s740_s5 }
 0x158   : > { %s4266_s1 = scalar_lea.hbm %s5001_s8, %s4198_s3  ;;  %s3230_s30 = scalar_lea.hbm %s5001_s8, 512 }
 0x159   : > { %s3226_s22 = scalar_lea.hbm %s4266_s1, 256  ;;  %p3231_p3 = scmp.lt.u32.totalorder %s4266_s1, %s5001_s8 }
 0x15a   : > { %p3227_p9 = scmp.ne.s32.totalorder %s4266_s1, %s3226_s22  ;;  %p3232_p13 = scmp.lt.u32.totalorder %s3230_s30, %s3226_s22 }
 0x15b   : > { %p3234_p2 = scmp.lt.u32.totalorder %s3226_s22, %s4266_s1 }
 0x15c   : > { %p3228_p7 = pnand %p3227_p9, %p4999_p8  ;;  %p3233_p12 = por %p3232_p13, %p3231_p3 }
 0x15e   : > { %p3229_p1 = pneg %p3228_p7  ;;  %p3235_p4 = por %p3234_p2, %p3233_p12 }
 0x160   : > { %p3236_p11 = pnand %p3235_p4, %p3229_p1 }
 0x162   : > { %3239 = shalt.err (!%p3236_p11)
}
 0x163   : > { %s3240_s6 = scalar_lea.vmem %s4269_s5, 256  ;;  %s3716_s12 = smov [#allocation17]  }
 0x164   : > { %p3241_p5 = scmp.ne.s32.totalorder %s4269_s5, %s3240_s6  ;;  %s3244_s11 = sshll.u32 %s3716_s12, 4  ;;  %s3245_s11 = int_to_ptr.vmem [resolvable:$false] %s3244_s11 }
 0x165   : > { %s3246_s2 = scalar_lea.vmem %s3245_s11, 512  ;;  %p3247_p6 = scmp.lt.s32.totalorder %s4269_s5, %s3245_s11 }
 0x166   : > { %p3242_p0 = pnand %p3241_p5, %p4999_p8  ;;  %p3248_p9 = scmp.lt.s32.totalorder %s3246_s2, %s3240_s6 }
 0x168   : > { %p3243_p10 = pneg %p3242_p0  ;;  %p3249_p7 = por %p3248_p9, %p3247_p6 }
 0x16a   : > { %p3250_p3 = pnand %p3249_p7, %p3243_p10 }
 0x16c   : > { %3253 = shalt.err (!%p3250_p3)
}
 0x16d   : > { %s5002_s22 = smov 4   ;;  %s5003_s26 = smov 64  }
 0x16e   : > { %2720 = dma.hbm_to_vmem [thread:$0]  (%p4999_p8), %s4266_s1, 256, %s4269_s5, %s4135_s17, %s5003_s26, %s5003_s26, %s5002_s22  }
 0x16f   : > { %s5004_s9 = sld [smem:[#allocation75_spill]]  ;;  %s753_s6 = scalar_lea.vmem [#allocation18], %s4166_s24 }
 0x170   : > { %s760_s12 = sshll.u32 %s753_s6, 4  ;;  %s761_s12 = int_to_ptr.vmem [resolvable:$true] %s760_s12 }
 0x175   : > { %s4300_s15 = scalar_lea.hbm %s5004_s9, %s4235_s16  ;;  %s3258_s1 = scalar_lea.hbm %s5004_s9, 32 }
 0x176   : > { %s3254_s11 = scalar_lea.hbm %s4300_s15, 16  ;;  %p3259_p2 = scmp.lt.u32.totalorder %s4300_s15, %s5004_s9 }
 0x177   : > { %p3255_p1 = scmp.ne.s32.totalorder %s4300_s15, %s3254_s11  ;;  %p3260_p4 = scmp.lt.u32.totalorder %s3258_s1, %s3254_s11 }
 0x178   : > { %p3262_p5 = scmp.lt.u32.totalorder %s3254_s11, %s4300_s15 }
 0x179   : > { %p3256_p13 = pnand %p3255_p1, %p4999_p8  ;;  %p3261_p11 = por %p3260_p4, %p3259_p2 }
 0x17b   : > { %p3257_p12 = pneg %p3256_p13  ;;  %p3263_p0 = por %p3262_p5, %p3261_p11 }
 0x17d   : > { %p3264_p10 = pnand %p3263_p0, %p3257_p12 }
 0x17f   : > { %3267 = shalt.err (!%p3264_p10)
}
 0x180   : > { %s3268_s0 = scalar_lea.vmem %s761_s12, 16  ;;  %s3717_s6 = smov [#allocation18]  }
 0x181   : > { %p3269_p6 = scmp.ne.s32.totalorder %s761_s12, %s3268_s0  ;;  %s3272_s8 = sshll.u32 %s3717_s6, 4  ;;  %s3273_s8 = int_to_ptr.vmem [resolvable:$false] %s3272_s8 }
 0x182   : > { %s3274_s7 = scalar_lea.vmem %s3273_s8, 32  ;;  %p3275_p3 = scmp.lt.s32.totalorder %s761_s12, %s3273_s8 }
 0x183   : > { %p3270_p9 = pnand %p3269_p6, %p4999_p8  ;;  %p3276_p1 = scmp.lt.s32.totalorder %s3274_s7, %s3268_s0 }
 0x185   : > { %p3271_p7 = pneg %p3270_p9  ;;  %p3277_p13 = por %p3276_p1, %p3275_p3 }
 0x187   : > { %p3278_p2 = pnand %p3277_p13, %p3271_p7 }
 0x189   : > { %3281 = shalt.err (!%p3278_p2)
}
 0x18a   : > { %2721 = dma.hbm_to_vmem [thread:$0]  (%p4999_p8), %s4300_s15, 16, %s761_s12, %s4170_s14  }
 0x18b   : > { %s4325_s1 = scalar_lea.hbm %s4890_s10, %s4235_s16  ;;  %s770_s8 = scalar_lea.vmem [#allocation19], %s4166_s24 }
 0x18c   : > { %s777_s5 = sshll.u32 %s770_s8, 4  ;;  %s3282_s30 = scalar_lea.hbm %s4325_s1, 16  ;;  %s778_s5 = int_to_ptr.vmem [resolvable:$true] %s777_s5 }
 0x18d   : > { %p3283_p12 = scmp.ne.s32.totalorder %s4325_s1, %s3282_s30  ;;  %s3286_s15 = scalar_lea.hbm %s4890_s10, 32 }
 0x18e   : > { %p3287_p5 = scmp.lt.u32.totalorder %s4325_s1, %s4890_s10  ;;  %p3288_p0 = scmp.lt.u32.totalorder %s3286_s15, %s3282_s30 }
 0x18f   : > { %p3284_p4 = pnand %p3283_p12, %p4999_p8  ;;  %p3290_p6 = scmp.lt.u32.totalorder %s3282_s30, %s4325_s1 }
 0x190   : > { %p3289_p10 = por %p3288_p0, %p3287_p5 }
 0x191   : > { %p3285_p11 = pneg %p3284_p4 }
 0x192   : > { %p3291_p9 = por %p3290_p6, %p3289_p10 }
 0x194   : > { %p3292_p7 = pnand %p3291_p9, %p3285_p11 }
 0x196   : > { %3295 = shalt.err (!%p3292_p7)
}
 0x197   : > { %s3296_s11 = scalar_lea.vmem %s778_s5, 16  ;;  %s3718_s2 = smov [#allocation19]  }
 0x198   : > { %p3297_p3 = scmp.ne.s32.totalorder %s778_s5, %s3296_s11  ;;  %s3300_s8 = sshll.u32 %s3718_s2, 4  ;;  %s3301_s8 = int_to_ptr.vmem [resolvable:$false] %s3300_s8 }
 0x199   : > { %s3302_s0 = scalar_lea.vmem %s3301_s8, 32  ;;  %p3303_p2 = scmp.lt.s32.totalorder %s778_s5, %s3301_s8 }
 0x19a   : > { %p3298_p1 = pnand %p3297_p3, %p4999_p8  ;;  %p3304_p12 = scmp.lt.s32.totalorder %s3302_s0, %s3296_s11 }
 0x19c   : > { %p3299_p13 = pneg %p3298_p1  ;;  %p3305_p4 = por %p3304_p12, %p3303_p2 }
 0x19e   : > { %p3306_p0 = pnand %p3305_p4, %p3299_p13 }
 0x1a0   : > { %3309 = shalt.err (!%p3306_p0)
}
 0x1a1   : > { %2722 = dma.hbm_to_vmem [thread:$0]  (%p4999_p8), %s4325_s1, 16, %s778_s5, %s4135_s17  }
 0x1a2   : > { %s5005_s15 = sld [smem:[#allocation76_spill]]  ;;  %s787_s7 = scalar_lea.vmem [#allocation20], %s4166_s24 }
 0x1a3   : > { %s794_s11 = sshll.u32 %s787_s7, 4  ;;  %s795_s11 = int_to_ptr.vmem [resolvable:$true] %s794_s11 }
 0x1a8   : > { %s4350_s12 = scalar_lea.hbm %s5005_s15, %s4235_s16  ;;  %s3314_s1 = scalar_lea.hbm %s5005_s15, 32 }
 0x1a9   : > { %s3310_s2 = scalar_lea.hbm %s4350_s12, 16  ;;  %p3315_p6 = scmp.lt.u32.totalorder %s4350_s12, %s5005_s15 }
 0x1aa   : > { %p3311_p11 = scmp.ne.s32.totalorder %s4350_s12, %s3310_s2  ;;  %p3316_p9 = scmp.lt.u32.totalorder %s3314_s1, %s3310_s2 }
 0x1ab   : > { %p3318_p3 = scmp.lt.u32.totalorder %s3310_s2, %s4350_s12 }
 0x1ac   : > { %p3312_p5 = pnand %p3311_p11, %p4999_p8  ;;  %p3317_p7 = por %p3316_p9, %p3315_p6 }
 0x1ae   : > { %p3313_p10 = pneg %p3312_p5  ;;  %p3319_p1 = por %p3318_p3, %p3317_p7 }
 0x1b0   : > { %p3320_p13 = pnand %p3319_p1, %p3313_p10 }
 0x1b2   : > { %3323 = shalt.err (!%p3320_p13)
}
 0x1b3   : > { %s3324_s6 = scalar_lea.vmem %s795_s11, 16  ;;  %s3719_s7 = smov [#allocation20]  }
 0x1b4   : > { %p3325_p2 = scmp.ne.s32.totalorder %s795_s11, %s3324_s6  ;;  %s3328_s9 = sshll.u32 %s3719_s7, 4  ;;  %s3329_s9 = int_to_ptr.vmem [resolvable:$false] %s3328_s9 }
 0x1b5   : > { %s3330_s8 = scalar_lea.vmem %s3329_s9, 32  ;;  %p3331_p0 = scmp.lt.s32.totalorder %s795_s11, %s3329_s9 }
 0x1b6   : > { %p3326_p12 = pnand %p3325_p2, %p4999_p8  ;;  %p3332_p11 = scmp.lt.s32.totalorder %s3330_s8, %s3324_s6 }
 0x1b8   : > { %p3327_p4 = pneg %p3326_p12  ;;  %p3333_p5 = por %p3332_p11, %p3331_p0 }
 0x1ba   : > { %p3334_p6 = pnand %p3333_p5, %p3327_p4 }
 0x1bc   : > { %3337 = shalt.err (!%p3334_p6)
}
 0x1bd   : > { %2723 = dma.hbm_to_vmem [thread:$0]  (%p4999_p8), %s4350_s12, 16, %s795_s11, %s4170_s14  }
 0x1be   : > { %s5006_s1 = sld [smem:[#allocation77_spill]]  ;;  %s805_s9 = scalar_lea.vmem [#allocation21], %s4195_s20 }
 0x1bf   : > { %s812_s6 = sshll.u32 %s805_s9, 4  ;;  %s4378_s6 = int_to_ptr.vmem [resolvable:$true] %s812_s6 }
 0x1c4   : > { %s5007_s5 = smov %s5006_s1  ;;  %s4375_s30 = scalar_lea.hbm %s5006_s1, %s4198_s3 }
 0x1c5   : > { %s3338_s7 = scalar_lea.hbm %s4375_s30, 256  ;;  %s3342_s11 = scalar_lea.hbm %s5007_s5, 512 }
 0x1c6   : > { %p3339_p10 = scmp.ne.s32.totalorder %s4375_s30, %s3338_s7  ;;  %p3343_p3 = scmp.lt.u32.totalorder %s4375_s30, %s5007_s5 }
 0x1c7   : > { %p3344_p1 = scmp.lt.u32.totalorder %s3342_s11, %s3338_s7  ;;  %p3346_p2 = scmp.lt.u32.totalorder %s3338_s7, %s4375_s30 }
 0x1c8   : > { %p3340_p9 = pnand %p3339_p10, %p4999_p8 }
 0x1c9   : > { %p3345_p13 = por %p3344_p1, %p3343_p3 }
 0x1ca   : > { %p3341_p7 = pneg %p3340_p9 }
 0x1cb   : > { %p3347_p12 = por %p3346_p2, %p3345_p13 }
 0x1cd   : > { %p3348_p4 = pnand %p3347_p12, %p3341_p7 }
 0x1cf   : > { %3351 = shalt.err (!%p3348_p4)
}
 0x1d0   : > { %s3352_s20 = scalar_lea.vmem %s4378_s6, 256  ;;  %s3720_s0 = smov [#allocation21]  }
 0x1d1   : > { %p3353_p0 = scmp.ne.s32.totalorder %s4378_s6, %s3352_s20  ;;  %s3356_s1 = sshll.u32 %s3720_s0, 4  ;;  %s3357_s1 = int_to_ptr.vmem [resolvable:$false] %s3356_s1 }
 0x1d2   : > { %s3358_s9 = scalar_lea.vmem %s3357_s1, 512  ;;  %p3359_p6 = scmp.lt.s32.totalorder %s4378_s6, %s3357_s1 }
 0x1d3   : > { %p3354_p11 = pnand %p3353_p0, %p4999_p8  ;;  %p3360_p10 = scmp.lt.s32.totalorder %s3358_s9, %s3352_s20 }
 0x1d5   : > { %p3355_p5 = pneg %p3354_p11  ;;  %p3361_p9 = por %p3360_p10, %p3359_p6 }
 0x1d7   : > { %p3362_p3 = pnand %p3361_p9, %p3355_p5 }
 0x1d9   : > { %3365 = shalt.err (!%p3362_p3)
}
 0x1da   : > { %2724 = dma.hbm_to_vmem [thread:$0]  (%p4999_p8), %s4375_s30, 256, %s4378_s6, %s4135_s17, %s5003_s26, %s5003_s26, %s5002_s22  }
 0x1db   : > { %s5008_s12 = sld [smem:[#allocation78_spill]]  ;;  %s825_s2 = scalar_lea.vmem [#allocation22], %s4166_s24 }
 0x1dc   : > { %s832_s3 = sshll.u32 %s825_s2, 4  ;;  %s833_s3 = int_to_ptr.vmem [resolvable:$true] %s832_s3 }
 0x1e1   : > { %s4409_s11 = scalar_lea.hbm %s5008_s12, %s4235_s16  ;;  %s3370_s6 = scalar_lea.hbm %s5008_s12, 32 }
 0x1e2   : > { %s3366_s0 = scalar_lea.hbm %s4409_s11, 16  ;;  %p3371_p2 = scmp.lt.u32.totalorder %s4409_s11, %s5008_s12 }
 0x1e3   : > { %p3367_p7 = scmp.ne.s32.totalorder %s4409_s11, %s3366_s0  ;;  %p3372_p12 = scmp.lt.u32.totalorder %s3370_s6, %s3366_s0 }
 0x1e4   : > { %p3374_p0 = scmp.lt.u32.totalorder %s3366_s0, %s4409_s11 }
 0x1e5   : > { %p3368_p1 = pnand %p3367_p7, %p4999_p8  ;;  %p3373_p4 = por %p3372_p12, %p3371_p2 }
 0x1e7   : > { %p3369_p13 = pneg %p3368_p1  ;;  %p3375_p11 = por %p3374_p0, %p3373_p4 }
 0x1e9   : > { %p3376_p5 = pnand %p3375_p11, %p3369_p13 }
 0x1eb   : > { %3379 = shalt.err (!%p3376_p5)
}
 0x1ec   : > { %s3380_s8 = scalar_lea.vmem %s833_s3, 16  ;;  %s3721_s2 = smov [#allocation22]  }
 0x1ed   : > { %p3381_p6 = scmp.ne.s32.totalorder %s833_s3, %s3380_s8  ;;  %s3384_s20 = sshll.u32 %s3721_s2, 4  ;;  %s3385_s20 = int_to_ptr.vmem [resolvable:$false] %s3384_s20 }
 0x1ee   : > { %s3386_s1 = scalar_lea.vmem %s3385_s20, 32  ;;  %p3387_p3 = scmp.lt.s32.totalorder %s833_s3, %s3385_s20 }
 0x1ef   : > { %p3382_p10 = pnand %p3381_p6, %p4999_p8  ;;  %p3388_p7 = scmp.lt.s32.totalorder %s3386_s1, %s3380_s8 }
 0x1f1   : > { %p3383_p9 = pneg %p3382_p10  ;;  %p3389_p1 = por %p3388_p7, %p3387_p3 }
 0x1f3   : > { %p3390_p2 = pnand %p3389_p1, %p3383_p9 }
 0x1f5   : > { %3393 = shalt.err (!%p3390_p2)
}
 0x1f6   : > { %2725 = dma.hbm_to_vmem [thread:$0]  (%p4999_p8), %s4409_s11, 16, %s833_s3, %s4170_s14  }
 0x1f7   : > { %s2578_s0 = sshll.u32 %s3692_s27, 9  ;;  %s5009_s9 = sld [smem:[#allocation79_spill]] }
 0x1f8   : > { %s5010_s2 = sshll.u32 %s4166_s24, 5 }
 0x1f9   : > { %s843_s20 = scalar_lea.vmem [#allocation23], %s5010_s2 }
 0x1fa   : > { %s850_s8 = sshll.u32 %s843_s20, 4  ;;  %s4439_s8 = int_to_ptr.vmem [resolvable:$true] %s850_s8 }
 0x1fd   : > { %s4435_s7 = scalar_lea.hbm %s5009_s9, %s2578_s0  ;;  %s3398_s30 = scalar_lea.hbm %s5009_s9, 1024 }
 0x1fe   : > { %s3394_s1 = scalar_lea.hbm %s4435_s7, 512  ;;  %p3399_p0 = scmp.lt.u32.totalorder %s4435_s7, %s5009_s9 }
 0x1ff   : > { %p3395_p13 = scmp.ne.s32.totalorder %s4435_s7, %s3394_s1  ;;  %p3400_p11 = scmp.lt.u32.totalorder %s3398_s30, %s3394_s1 }
 0x200   : > { %p3402_p6 = scmp.lt.u32.totalorder %s3394_s1, %s4435_s7 }
 0x201   : > { %p3396_p12 = pnand %p3395_p13, %p4999_p8  ;;  %p3401_p5 = por %p3400_p11, %p3399_p0 }
 0x203   : > { %p3397_p4 = pneg %p3396_p12  ;;  %p3403_p10 = por %p3402_p6, %p3401_p5 }
 0x205   : > { %p3404_p9 = pnand %p3403_p10, %p3397_p4 }
 0x207   : > { %3407 = shalt.err (!%p3404_p9)
}
 0x208   : > { %s3408_s2 = scalar_lea.vmem %s4439_s8, 512  ;;  %s3722_s20 = smov [#allocation23]  }
 0x209   : > { %p3409_p3 = scmp.ne.s32.totalorder %s4439_s8, %s3408_s2  ;;  %s3412_s11 = sshll.u32 %s3722_s20, 4  ;;  %s3413_s11 = int_to_ptr.vmem [resolvable:$false] %s3412_s11 }
 0x20a   : > { %s3414_s3 = scalar_lea.vmem %s3413_s11, 1024  ;;  %p3415_p2 = scmp.lt.s32.totalorder %s4439_s8, %s3413_s11 }
 0x20b   : > { %p3410_p7 = pnand %p3409_p3, %p4999_p8  ;;  %p3416_p13 = scmp.lt.s32.totalorder %s3414_s3, %s3408_s2 }
 0x20d   : > { %p3411_p1 = pneg %p3410_p7  ;;  %p3417_p12 = por %p3416_p13, %p3415_p2 }
 0x20f   : > { %p3418_p0 = pnand %p3417_p12, %p3411_p1 }
 0x211   : > { %3421 = shalt.err (!%p3418_p0)
}
 0x212   : > { %2726 = dma.hbm_to_vmem [thread:$0]  (%p4999_p8), %s4435_s7, 512, %s4439_s8, %s4135_s17, %s5003_s26, %s5003_s26, %s5002_s22  }
 0x213   : > { %s5011_s0 = sld [smem:[#allocation80_spill]]  ;;  %s863_s2 = scalar_lea.vmem [#allocation24], %s4166_s24 }
 0x214   : > { %s870_s20 = sshll.u32 %s863_s2, 4  ;;  %s871_s20 = int_to_ptr.vmem [resolvable:$true] %s870_s20 }
 0x219   : > { %s4470_s6 = scalar_lea.hbm %s5011_s0, %s4235_s16  ;;  %s3426_s22 = scalar_lea.hbm %s5011_s0, 32 }
 0x21a   : > { %s3422_s11 = scalar_lea.hbm %s4470_s6, 16  ;;  %p3427_p6 = scmp.lt.u32.totalorder %s4470_s6, %s5011_s0 }
 0x21b   : > { %p3423_p4 = scmp.ne.s32.totalorder %s4470_s6, %s3422_s11  ;;  %p3428_p10 = scmp.lt.u32.totalorder %s3426_s22, %s3422_s11 }
 0x21c   : > { %p3430_p3 = scmp.lt.u32.totalorder %s3422_s11, %s4470_s6 }
 0x21d   : > { %p3424_p11 = pnand %p3423_p4, %p4999_p8  ;;  %p3429_p9 = por %p3428_p10, %p3427_p6 }
 0x21f   : > { %p3425_p5 = pneg %p3424_p11  ;;  %p3431_p7 = por %p3430_p3, %p3429_p9 }
 0x221   : > { %p3432_p1 = pnand %p3431_p7, %p3425_p5 }
 0x223   : > { %3435 = shalt.err (!%p3432_p1)
}
 0x224   : > { %s3436_s8 = scalar_lea.vmem %s871_s20, 16  ;;  %s3723_s1 = smov [#allocation24]  }
 0x225   : > { %p3437_p2 = scmp.ne.s32.totalorder %s871_s20, %s3436_s8  ;;  %s3440_s30 = sshll.u32 %s3723_s1, 4  ;;  %s3441_s30 = int_to_ptr.vmem [resolvable:$false] %s3440_s30 }
 0x226   : > { %s3442_s5 = scalar_lea.vmem %s3441_s30, 32  ;;  %p3443_p0 = scmp.lt.s32.totalorder %s871_s20, %s3441_s30 }
 0x227   : > { %p3438_p13 = pnand %p3437_p2, %p4999_p8  ;;  %p3444_p4 = scmp.lt.s32.totalorder %s3442_s5, %s3436_s8 }
 0x229   : > { %p3439_p12 = pneg %p3438_p13  ;;  %p3445_p11 = por %p3444_p4, %p3443_p0 }
 0x22b   : > { %p3446_p6 = pnand %p3445_p11, %p3439_p12 }
 0x22d   : > { %3449 = shalt.err (!%p3446_p6)
}
 0x22e   : > { %2727 = dma.hbm_to_vmem [thread:$0]  (%p4999_p8), %s4470_s6, 16, %s871_s20, %s4170_s14  }
 0x22f   : > { %s5012_s3 = sld [smem:[#allocation81_spill]]  ;;  %s880_s26 = scalar_lea.vmem [#allocation25], %s4166_s24 }
 0x230   : > { %s887_s8 = sshll.u32 %s880_s26, 4  ;;  %s888_s8 = int_to_ptr.vmem [resolvable:$true] %s887_s8 }
 0x235   : > { %s5013_s7 = smov %s5012_s3  ;;  %s4495_s22 = scalar_lea.hbm %s5012_s3, %s4235_s16 }
 0x236   : > { %s3450_s1 = scalar_lea.hbm %s4495_s22, 16  ;;  %s3454_s6 = scalar_lea.hbm %s5013_s7, 32 }
 0x237   : > { %p3451_p5 = scmp.ne.s32.totalorder %s4495_s22, %s3450_s1  ;;  %p3455_p3 = scmp.lt.u32.totalorder %s4495_s22, %s5013_s7 }
 0x238   : > { %p3456_p7 = scmp.lt.u32.totalorder %s3454_s6, %s3450_s1  ;;  %p3458_p2 = scmp.lt.u32.totalorder %s3450_s1, %s4495_s22 }
 0x239   : > { %p3452_p10 = pnand %p3451_p5, %p4999_p8 }
 0x23a   : > { %p3457_p1 = por %p3456_p7, %p3455_p3 }
 0x23b   : > { %p3453_p9 = pneg %p3452_p10 }
 0x23c   : > { %p3459_p13 = por %p3458_p2, %p3457_p1 }
 0x23e   : > { %p3460_p12 = pnand %p3459_p13, %p3453_p9 }
 0x240   : > { %3463 = shalt.err (!%p3460_p12)
}
 0x241   : > { %s3464_s11 = scalar_lea.vmem %s888_s8, 16  ;;  %s3724_s3 = smov [#allocation25]  }
 0x242   : > { %p3465_p0 = scmp.ne.s32.totalorder %s888_s8, %s3464_s11  ;;  %s3468_s26 = sshll.u32 %s3724_s3, 4  ;;  %s3469_s26 = int_to_ptr.vmem [resolvable:$false] %s3468_s26 }
 0x243   : > { %s3470_s30 = scalar_lea.vmem %s3469_s26, 32  ;;  %p3471_p6 = scmp.lt.s32.totalorder %s888_s8, %s3469_s26 }
 0x244   : > { %p3466_p4 = pnand %p3465_p0, %p4999_p8  ;;  %p3472_p5 = scmp.lt.s32.totalorder %s3470_s30, %s3464_s11 }
 0x246   : > { %p3467_p11 = pneg %p3466_p4  ;;  %p3473_p10 = por %p3472_p5, %p3471_p6 }
 0x248   : > { %p3474_p3 = pnand %p3473_p10, %p3467_p11 }
 0x24a   : > { %3477 = shalt.err (!%p3474_p3)
}
 0x24b   : > { %2728 = dma.hbm_to_vmem [thread:$0]  (%p4999_p8), %s4495_s22, 16, %s888_s8, %s4135_s17  }
 0x24c   : > { %s5014_s6 = sld [smem:[#allocation82_spill]]  ;;  %s897_s2 = scalar_lea.vmem [#allocation26], %s4166_s24 }
 0x24d   : > { %s904_s11 = sshll.u32 %s897_s2, 4  ;;  %s905_s11 = int_to_ptr.vmem [resolvable:$true] %s904_s11 }
 0x252   : > { %s4520_s20 = scalar_lea.hbm %s5014_s6, %s4235_s16  ;;  %s3482_s17 = scalar_lea.hbm %s5014_s6, 32 }
 0x253   : > { %s3478_s3 = scalar_lea.hbm %s4520_s20, 16  ;;  %p3483_p2 = scmp.lt.u32.totalorder %s4520_s20, %s5014_s6 }
 0x254   : > { %p3479_p9 = scmp.ne.s32.totalorder %s4520_s20, %s3478_s3  ;;  %p3484_p13 = scmp.lt.u32.totalorder %s3482_s17, %s3478_s3 }
 0x255   : > { %p3486_p0 = scmp.lt.u32.totalorder %s3478_s3, %s4520_s20 }
 0x256   : > { %p3480_p7 = pnand %p3479_p9, %p4999_p8  ;;  %p3485_p12 = por %p3484_p13, %p3483_p2 }
 0x258   : > { %p3481_p1 = pneg %p3480_p7  ;;  %p3487_p4 = por %p3486_p0, %p3485_p12 }
 0x25a   : > { %p3488_p11 = pnand %p3487_p4, %p3481_p1 }
 0x25c   : > { %3491 = shalt.err (!%p3488_p11)
}
 0x25d   : > { %s3492_s24 = scalar_lea.vmem %s905_s11, 16  ;;  %s3725_s16 = smov [#allocation26]  }
 0x25e   : > { %p3493_p6 = scmp.ne.s32.totalorder %s905_s11, %s3492_s24  ;;  %s3496_s1 = sshll.u32 %s3725_s16, 4  ;;  %s3497_s1 = int_to_ptr.vmem [resolvable:$false] %s3496_s1 }
 0x25f   : > { %s3498_s5 = scalar_lea.vmem %s3497_s1, 32  ;;  %p3499_p3 = scmp.lt.s32.totalorder %s905_s11, %s3497_s1 }
 0x260   : > { %p3494_p5 = pnand %p3493_p6, %p4999_p8  ;;  %p3500_p9 = scmp.lt.s32.totalorder %s3498_s5, %s3492_s24 }
 0x262   : > { %p3495_p10 = pneg %p3494_p5  ;;  %p3501_p7 = por %p3500_p9, %p3499_p3 }
 0x264   : > { %p3502_p2 = pnand %p3501_p7, %p3495_p10 }
 0x266   : > { %3505 = shalt.err (!%p3502_p2)
}
 0x267   : > { %2729 = dma.hbm_to_vmem [thread:$0]  (%p4999_p8), %s4520_s20, 16, %s905_s11, %s4170_s14  }
 0x268 PF: > { %s5015_s2 = sld [smem:[#allocation65_spill]] }
 0x26e   : > { %p5016_p1 = scmp.ne.s32.totalorder %s5015_s2, 0 }
 0x26f   : > { %s5017_s3 = sld [smem:[#allocation56_spill]] (!%p5016_p1)  ;;  %s5019_s30 = sld [smem:[#allocation59_spill]] (!%p5016_p1) }
 0x270   : > { %913 = sbr.rel (%p5016_p1) target bundleno = 3833 (0xef9), region = 100  ;;  %s5018_s26 = sld [smem:[#allocation53_spill]] (!%p5016_p1) }
 0x275   : > { %s915_s17 = sand.u32 (!%p5016_p1), 1, %s5017_s3   ;;  %p5020_p13 = scmp.ne.s32.totalorder (!%p5016_p1), %s5019_s30, 0 }
 0x276   : > { %s4545_s22 = sand.u32 (!%p5016_p1), 1, %s5018_s26   ;;  %s4548_s24 = scalar_lea.sflag (!%p5016_p1), [#allocation5], %s915_s17 }
 0x277   : > { %s2522_s8 = sshll.u32 %s4545_s22, 3 }
 0x278   : > { %s4550_s16 = scalar_lea.vmem [#allocation4], %s2522_s8 }
 0x279   : > { %3579 = dma.done.wait (%p5020_p13), %s4548_s24, 128  }
 0x27a   : > { %3581 = vsyncadd (%p5020_p13), %s4548_s24, 4294967168  ;;  %p5021_p8 = scmp.eq.s32.totalorder %s5017_s3, 0 }
 0x27c   : > { %3583 = dma.done.wait (%p5021_p8), [#allocation8], 144   ;;  %p5022_p12 = pmov %p5021_p8 }
 0x27d   : > { %s4562_s13 = scalar_lea.sflag [#allocation11], %s915_s17  ;;  %s935_s14 = scalar_lea.vmem [#allocation10], %s4545_s22 }
 0x27e   : > { %3585 = vsyncadd (%p5022_p12), [#allocation8], 4294967152 }
 0x27f   : > { %3587 = dma.done.wait (%p5020_p13), %s4562_s13, 16  }
 0x280   : > { %3589 = vsyncadd (%p5020_p13), %s4562_s13, 4294967280  ;;  %p5023_p0 = pmov %p5021_p8 }
 0x282   : > { %3591 = dma.done.wait (%p5023_p0), [#allocation11], 16   ;;  %p5024_p4 = pmov %p5023_p0 }
 0x283   : > { %p5025_p11 = pmov %p5023_p0 }
 0x284   : > { %3593 = vsyncadd (%p5024_p4), [#allocation11], 4294967280 }
 0x285   : > { %3595 = dma.done.wait (%p5025_p11), [#allocation14], 16   ;;  %p5026_p6 = pmov %p5023_p0 }
 0x286   : > { %s5027_s20 = sld [smem:[#allocation51_spill]]  ;;  %s5028_s11 = sld [smem:[#allocation62_spill]] }
 0x287   : > { %3597 = vsyncadd (%p5026_p6), [#allocation14], 4294967280 }
 0x28c   : > { %s4580_s1 = sand.u32 1, %s5027_s20   ;;  %p5029_p5 = scmp.ne.s32.totalorder %s5028_s11, 0 }
 0x28d   : > { %s4583_s5 = sshll.u32 %s4580_s1, 4 }
 0x28e   : > { %s952_s2 = scalar_lea.vmem [#allocation15], %s4583_s5 }
 0x28f   : > { %3599 = dma.done.wait (%p5029_p5), %s4548_s24, 256  }
 0x290   : > { %3601 = vsyncadd (%p5029_p5), %s4548_s24, 4294967040  ;;  %s960_s26 = scalar_lea.vmem [#allocation16], %s4580_s1 }
 0x291   : > { %3603 = dma.done.wait (%p5029_p5), %s4562_s13, 16  }
 0x292   : > { %3605 = vsyncadd (%p5029_p5), %s4562_s13, 4294967280  ;;  %s969_s30 = scalar_lea.vmem [#allocation17], %s4583_s5 }
 0x293   : > { %3607 = dma.done.wait (%p5029_p5), %s4548_s24, 256  }
 0x294   : > { %3609 = vsyncadd (%p5029_p5), %s4548_s24, 4294967040 }
 0x295   : > { %3611 = dma.done.wait (%p5029_p5), %s4562_s13, 16  }
 0x296   : > { %3613 = vsyncadd (%p5029_p5), %s4562_s13, 4294967280 }
 0x297   : > { %3615 = dma.done.wait (%p5029_p5), %s4548_s24, 16  }
 0x298   : > { %3617 = vsyncadd (%p5029_p5), %s4548_s24, 4294967280 }
 0x299   : > { %3619 = dma.done.wait (%p5029_p5), %s4562_s13, 16  }
 0x29a   : > { %3621 = vsyncadd (%p5029_p5), %s4562_s13, 4294967280 }
 0x29b   : > { %3623 = dma.done.wait (%p5029_p5), %s4548_s24, 256  }
 0x29c   : > { %3625 = vsyncadd (%p5029_p5), %s4548_s24, 4294967040 }
 0x29d   : > { %3627 = dma.done.wait (%p5029_p5), %s4562_s13, 16  }
 0x29e   : > { %3629 = vsyncadd (%p5029_p5), %s4562_s13, 4294967280  ;;  %s2530_s8 = sshll.u32 %s4580_s1, 5 }
 0x29f   : > { %s4642_s17 = scalar_lea.vmem [#allocation23], %s2530_s8 }
 0x2a0   : > { %3631 = dma.done.wait (%p5029_p5), %s4548_s24, 512  }
 0x2a1   : > { %3633 = vsyncadd (%p5029_p5), %s4548_s24, 4294966784 }
 0x2a2   : > { %3635 = dma.done.wait (%p5029_p5), %s4562_s13, 16  }
 0x2a3   : > { %3637 = vsyncadd (%p5029_p5), %s4562_s13, 4294967280  ;;  %s1035_s8 = scalar_lea.vmem [#allocation25], %s4580_s1 }
 0x2a4   : > { %3639 = dma.done.wait (%p5029_p5), %s4548_s24, 16  }
 0x2a5   : > { %3641 = vsyncadd (%p5029_p5), %s4548_s24, 4294967280 }
 0x2a6   : > { %3643 = dma.done.wait (%p5029_p5), %s4562_s13, 16  }
 0x2a7   : > { %3645 = vsyncadd (%p5029_p5), %s4562_s13, 4294967280  ;;  %p5030_p10 = pmov %p5023_p0 }
 0x2a8   : > { %p5031_p3 = pmov %p5023_p0 }
 0x2a9   : > { %3647 = dma.done.wait (%p5030_p10), [#allocation14], 256  }
 0x2aa   : > { %3649 = vsyncadd (%p5031_p3), [#allocation14], 4294967040  ;;  %p5032_p9 = pmov %p5023_p0 }
 0x2ab   : > { %p5033_p7 = pmov %p5023_p0 }
 0x2ac   : > { %3651 = dma.done.wait (%p5032_p9), [#allocation29], 16  }
 0x2ad   : > { %3653 = vsyncadd (%p5033_p7), [#allocation29], 4294967280  ;;  %s1162_s24 = scalar_lea.vmem [#allocation30], %s4545_s22  ;;  %s5034_s20 = sld [smem:[#allocation54_spill]] }
 0x2b3   : > { %p2533_p2 = scmp.ne.s32.totalorder %s5034_s20, 0 }
 0x2b4   : > { %v1168_v0 = vld [vmem:[%s4550_s16] sm:$0xff] (!%p2533_p2)  ;;  %v1169_v1 = vld [vmem:[#allocation7] sm:$0xff] (!%p2533_p2)  ;;  %v2534_v2 = vld [vmem:[#allocation9] ss:$0 sm:$0xff] (!%p2533_p2)  ;;  %vm1181_vm0 = vcmask (!%p2533_p2), 261120  }
 0x2b5   : > { %1167 = sbr.rel (%p2533_p2) target bundleno = 1011 (0x3f3), region = 184  ;;  %v1170_v3 = vadd.f32 (!%p2533_p2), %v1169_v1, %v1168_v0  ;;  %v2535_v15 = vld [vmem:[#allocation12] ss:$0 sm:$0xff] (!%p2533_p2)  ;;  %v2536_v17 = vld [vmem:[#allocation13] ss:$0 sm:$0xff] (!%p2533_p2) }
 0x2b7   : > { %v1178_v4 = vadd.f32 (!%p2533_p2), %v2534_v2, %v1170_v3 }
 0x2b9   : > { %v1182_v5 = vsel (!%p2533_p2), %vm1181_vm0, %v1178_v4, 0.0 }
 0x2ba   : > { %1183 = vadd.xlane.f32.xlu0 (!%p2533_p2), %v1182_v5 }
 0x347   : > { %v1184_v6 = vpop.xlane.xlu0 %1183 }
 0x348   : > { %v1186_v7 = vmul.f32 0.03125, %v1184_v6 }
 0x34a   : > { %v1187_v8 = vsub.f32 %v1178_v4, %v1186_v7 }
 0x34c   : > { %v1188_v9 = vmul.f32 %v1187_v8, %v1187_v8 }
 0x34e   : > { %v1189_v10 = vsel %vm1181_vm0, %v1188_v9, 0.0 }
 0x34f   : > { %1190 = vadd.xlane.f32.xlu0 %v1189_v10 }
 0x3dc   : > { %v1191_v11 = vpop.xlane.xlu0 %1190 }
 0x3dd   : > { %v1192_v12 = vmul.f32 0.03125, %v1191_v11 }
 0x3df   : > { %v1193_v13 = vadd.f32 1e-12, %v1192_v12 }
 0x3e1   : > { %2910 = vrsqrt.f32 %v1193_v13 }
 0x3eb   : > { %v2911_v14 = vpop.eup %2910 }
 0x3ec   : > { %v1195_v16 = vmul.f32 %v2911_v14, %v1187_v8 }
 0x3ee   : > { %v1202_v18 = vmul.f32 %v2535_v15, %v1195_v16 }
 0x3f0   : > { %v1209_v19 = vadd.f32 %v2536_v17, %v1202_v18 }
 0x3f2   : > { %1210 = vst.msk [vmem:[#allocation2] sm:$0xff] %vm1181_vm0, %v1209_v19 }
 0x3f3 PF: > { %v2912_v20 = vld [vmem:[%s952_s2] sm:$0xff]   ;;  %v3726_v21 = vmov 0.0   ;;  %v2913_v22 = vld [vmem:[%s952_s2 + $0x8] sm:$0xff]   ;;  %vm3727_vm1 = vmmov 0   ;;  %vm1237_vm2 = vcmask 261120   ;;  %s3728_s3 = smov 120  }
 0x3f4   : > { %2612 = vmatprep.subr.bf16.mxu0 %v3726_v21  ;;  %2620 = vmatprep.subr.bf16.mxu1 %v3726_v21  ;;  %v2537_v25 = vld [vmem:[%s960_s26] ss:$0 sm:$0xff]  ;;  %s3729_s16 = smov 96   ;;  %s3730_s13 = smov 80   ;;  %vm1291_vm3 = vcmask 64512   ;;  %vm1355_vm4 = vcmask 1043456  }
 0x3f5   : > { %2613 = vmatpush3.bf16.msra.mxu0 %v2912_v20  ;;  %2616 = vmatprep.mubr.msk.bf16.mxu0 %vm3727_vm1, %v3726_v21  ;;  %s3731_s11 = smov 88   ;;  %s3732_s2 = smov 72   ;;  %v2541_v43 = vld [vmem:[%s935_s14] ss:$0 sm:$0xff]  ;;  %vm1514_vm5 = vcmask 130112   ;;  %vm1630_vm6 = vcmask 195712  }
 0x3f6   : > { %2614 = vmatprep.subr.bf16.mxu0 %v3726_v21  ;;  %2622 = vmatprep.mubr.msk.bf16.mxu1 %vm3727_vm1, %v3726_v21  ;;  %s3733_s26 = smov 112   ;;  %s3734_s20 = smov 104   ;;  %vm1746_vm7 = vcmask 261312   ;;  %vm1963_vm8 = vcmask 523264  }
 0x3f7   : > { %s3735_s14 = smov 56  }
 0x3f9   : > { %v4693_v23 = vld [vmem:[#allocation2] sm:$0xff]  ;;  %2615 = vmatpush3.bf16.msra.mxu0 %v2913_v22 }
 0x3fa   : > { %v1213_v24 = vpack.c.bf16 %v4693_v23, %v4693_v23  ;;  %2626 = vmatprep.subr.bf16.mxu0 %v3726_v21 }
 0x3fc   : > { %2617 = vmatmul.mubr.msk.bf16.vlgmr.msra.gmra.mrb[0].mxu0 %vm1237_vm2, %v1213_v24 }
 0x3fd   : > { %2628 = vmatprep.mubr.msk.bf16.mxu0 %vm3727_vm1, %v3726_v21 }
 0x4cf   : > { %v1275_v26 = vpop.f32.mrb[0].mxu0 }
 0x4d0   : > { %v1276_v27 = vadd.f32 %v2537_v25, %v1275_v26  ;;  %v2618_v28 = vpop.f32.mrb[1].mxu0 }
 0x4d1   : > { %v1278_v29 = vpop.f32.mrb[2].mxu0 }
 0x4d2   : > { %v4706_v30 = vpack.c.bf16 %v1276_v27, %v1276_v27  ;;  %v2619_v31 = vpop.f32.mrb[3].mxu0 }
 0x4d4   : > { %1400 = vrot.lane.b32.xlu1 %v4706_v30, %s3728_s3  ;;  %1289 = vrot.lane.b32.xlu0 %v4706_v30, %s3729_s16  ;;  %s3736_s3 = smov 64   ;;  %s3737_s16 = smov 40  }
 0x4d8   : > { %1518 = vrot.lane.b32.xlu1 %v4706_v30, %s3730_s13  ;;  %1402 = vrot.lane.b32.xlu0 %v4706_v30, %s3731_s11  ;;  %s3738_s13 = smov 48   ;;  %s3739_s11 = smov 8  }
 0x4dc   : > { %1634 = vrot.lane.b32.xlu1 %v4706_v30, %s3732_s2  ;;  %1516 = vrot.lane.b32.xlu0 %v4706_v30, %s3733_s26  ;;  %s3740_s2 = smov 16   ;;  %s3741_s26 = smov 24  }
 0x4e0   : > { %1632 = vrot.lane.b32.xlu0 %v4706_v30, %s3734_s20  ;;  %s5036_s20 = scalar_lea.vmem [#allocation21], %s4583_s5  ;;  %s5040_s5 = scalar_lea.vmem [#allocation22], %s4580_s1 }
 0x546   : > { %v1290_v32 = vpop.permute.xlu0 %1289  ;;  %v1401_v35 = vpop.permute.xlu1 %1400 }
 0x547   : > { %v1296_v33 = vsel %vm1291_vm3, %v1290_v32, 0 }
 0x548   : > { %2621 = vmatpush3.bf16.xpose.msra.mxu1 %v1296_v33 }
 0x549   : > { %2632 = vmatprep.subr.bf16.mxu1 %v3726_v21 }
 0x54a   : > { %v1403_v34 = vpop.permute.xlu0 %1402  ;;  %v1519_v37 = vpop.permute.xlu1 %1518 }
 0x54b   : > { %v1408_v36 = vsel %vm1291_vm3, %v1403_v34, 0  ;;  %v1524_v38 = vsel %vm1291_vm3, %v1519_v37, 0 }
 0x54e   : > { %v1635_v39 = vpop.permute.xlu1 %1634  ;;  %v1517_v40 = vpop.permute.xlu0 %1516 }
 0x54f   : > { %2623 = vmatmul.mubr.msk.bf16.vlgmr.msra.gmra.mrb[0].mxu1 %vm1291_vm3, %v4706_v30  ;;  %v1640_v41 = vsel %vm1291_vm3, %v1635_v39, 0 }
 0x550   : > { %2633 = vmatpush3.bf16.xpose.msra.mxu1 %v1408_v36  ;;  %2634 = vmatprep.mubr.msk.bf16.mxu1 %vm3727_vm1, %v3726_v21 }
 0x551   : > { %2644 = vmatprep.subr.bf16.mxu1 %v3726_v21 }
 0x552   : > { %v1633_v42 = vpop.permute.xlu0 %1632 }
 0x557   : > { %2635 = vmatmul.mubr.msk.bf16.vlgmr.msra.gmra.mrb[4].mxu1 %vm1291_vm3, %v1401_v35 }
 0x558   : > { %2645 = vmatpush3.bf16.xpose.msra.mxu1 %v1524_v38  ;;  %2646 = vmatprep.mubr.msk.bf16.mxu1 %vm3727_vm1, %v3726_v21 }
 0x559   : > { %2656 = vmatprep.subr.bf16.mxu1 %v3726_v21 }
 0x55f   : > { %2647 = vmatmul.mubr.msk.bf16.vlgmr.msra.gmra.mrb[8].mxu1 %vm1291_vm3, %v1517_v40 }
 0x560   : > { %2657 = vmatpush3.bf16.xpose.msra.mxu1 %v1640_v41  ;;  %2658 = vmatprep.mubr.msk.bf16.mxu1 %vm3727_vm1, %v3726_v21 }
 0x561   : > { %2668 = vmatprep.subr.bf16.mxu1 %v3726_v21 }
 0x567   : > { %2659 = vmatmul.mubr.msk.bf16.vlgmr.msra.gmra.mrb[12].mxu1 %vm1291_vm3, %v1633_v42 }
 0x568   : > { %2672 = vmatprep.mubr.msk.bf16.mxu1 %vm3727_vm1, %v3726_v21 }
 0x622   : > { %v1332_v44 = vpop.f32.mrb[0].mxu1 }
 0x623   : > { %v1333_v45 = vadd.f32 %v2541_v43, %v1332_v44  ;;  %v2624_v46 = vpop.f32.mrb[1].mxu1 }
 0x624   : > { %v1335_v47 = vpop.f32.mrb[2].mxu1 }
 0x625   : > { %v2625_v48 = vpop.f32.mrb[3].mxu1  ;;  %v1338_v49 = vsel %vm1291_vm3, %v1333_v45, -inf }
 0x626   : > { %1339 = vmax.xlane.f32.xlu1 %v1338_v49 }
 0x62a   : > { %v1444_v50 = vpop.f32.mrb[4].mxu1 }
 0x62b   : > { %v1445_v51 = vadd.f32 %v2541_v43, %v1444_v50  ;;  %v2636_v52 = vpop.f32.mrb[5].mxu1 }
 0x62c   : > { %v1447_v53 = vpop.f32.mrb[6].mxu1 }
 0x62d   : > { %v2637_v54 = vpop.f32.mrb[7].mxu1  ;;  %v1450_v55 = vsel %vm1291_vm3, %v1445_v51, -inf }
 0x62e   : > { %1451 = vmax.xlane.f32.xlu0 %v1450_v55 }
 0x632   : > { %v1560_v56 = vpop.f32.mrb[8].mxu1 }
 0x633   : > { %v1561_v57 = vadd.f32 %v2541_v43, %v1560_v56  ;;  %v2648_v58 = vpop.f32.mrb[9].mxu1 }
 0x634   : > { %v1563_v59 = vpop.f32.mrb[10].mxu1  ;;  %v2914_v58 = vld [vmem:[%s969_s30] sm:$0xff]  }
 0x635   : > { %v2649_v60 = vpop.f32.mrb[11].mxu1  ;;  %v1566_v61 = vsel %vm1291_vm3, %v1561_v57, -inf  ;;  %2669 = vmatpush3.bf16.msra.mxu1 %v2914_v58  ;;  %v2915_v59 = vld [vmem:[%s969_s30 + $0x8] sm:$0xff]   ;;  %s5035_s30 = scalar_lea.vmem [#allocation18], %s4580_s1 }
 0x636   : > { %1567 = vmax.xlane.f32.xlu0 %v1566_v61  ;;  %2670 = vmatprep.subr.bf16.mxu1 %v3726_v21 }
 0x639   : > { %2671 = vmatpush3.bf16.msra.mxu1 %v2915_v59 }
 0x63a   : > { %v1676_v62 = vpop.f32.mrb[12].mxu1  ;;  %2684 = vmatprep.subr.bf16.mxu1 %v3726_v21 }
 0x63b   : > { %v1677_v63 = vadd.f32 %v2541_v43, %v1676_v62  ;;  %v2660_v0 = vpop.f32.mrb[13].mxu1 }
 0x63c   : > { %v1679_v1 = vpop.f32.mrb[14].mxu1 }
 0x63d   : > { %v2661_v2 = vpop.f32.mrb[15].mxu1  ;;  %v1682_v3 = vsel %vm1291_vm3, %v1677_v63, -inf }
 0x63e   : > { %1683 = vmax.xlane.f32.xlu1 %v1682_v3 }
 0x6b3   : > { %v1340_v4 = vpop.xlane.xlu1 %1339 }
 0x6b4   : > { %v1341_v5 = vsub.f32 %v1333_v45, %v1340_v4 }
 0x6b6   : > { %v1342_v6 = vmul.f32 1.442695, %v1341_v5 }
 0x6b8   : > { %2922 = vpow2.f32 %v1342_v6 }
 0x6bb   : > { %v1452_v7 = vpop.xlane.xlu0 %1451 }
 0x6bc   : > { %v1453_v8 = vsub.f32 %v1445_v51, %v1452_v7 }
 0x6be   : > { %v1454_v9 = vmul.f32 1.442695, %v1453_v8 }
 0x6c0   : > { %2924 = vpow2.f32 %v1454_v9  ;;  %v2550_v9 = vld [vmem:[%s5035_s30] ss:$0 sm:$0xff] }
 0x6c2   : > { %v2923_v10 = vpop.eup %2922 }
 0x6c3   : > { %v1568_v11 = vpop.xlane.xlu0 %1567  ;;  %v1344_v12 = vsel %vm1291_vm3, %v2923_v10, 0.0 }
 0x6c4   : > { %v1569_v13 = vsub.f32 %v1561_v57, %v1568_v11  ;;  %1345 = vadd.xlane.f32.xlu0 %v1344_v12 }
 0x6c6   : > { %v1570_v14 = vmul.f32 1.442695, %v1569_v13 }
 0x6c8   : > { %2926 = vpow2.f32 %v1570_v14 }
 0x6ca   : > { %v2925_v15 = vpop.eup %2924 }
 0x6cb   : > { %v1456_v16 = vsel %vm1291_vm3, %v2925_v15, 0.0  ;;  %v1684_v19 = vpop.xlane.xlu1 %1683 }
 0x6cc   : > { %1457 = vadd.xlane.f32.xlu1 %v1456_v16  ;;  %v1685_v20 = vsub.f32 %v1677_v63, %v1684_v19 }
 0x6ce   : > { %v1686_v22 = vmul.f32 1.442695, %v1685_v20 }
 0x6d0   : > { %2928 = vpow2.f32 %v1686_v22 }
 0x6d2   : > { %v2927_v17 = vpop.eup %2926 }
 0x6d3   : > { %v1572_v18 = vsel %vm1291_vm3, %v2927_v17, 0.0 }
 0x6d4   : > { %1573 = vadd.xlane.f32.xlu0 %v1572_v18 }
 0x6da   : > { %v2929_v24 = vpop.eup %2928 }
 0x6db   : > { %v1688_v25 = vsel %vm1291_vm3, %v2929_v24, 0.0 }
 0x6dd   : > { %1462 = vrot.lane.b32.xlu1 %v4706_v30, %s3735_s14  ;;  %s5037_s14 = smov %s5036_s20 }
 0x6ea   : > { %1350 = vrot.lane.b32.xlu0 %v4706_v30, %s3736_s3  ;;  %s5038_s3 = scalar_lea.vmem [#allocation19], %s4580_s1 }
 0x6ee   : > { %1694 = vrot.lane.b32.xlu0 %v4706_v30, %s3737_s16  ;;  %s5039_s16 = scalar_lea.vmem [#allocation20], %s4580_s1 }
 0x701   : > { %1689 = vadd.xlane.f32.xlu1 %v1688_v25 }
 0x712   : > { %1578 = vrot.lane.b32.xlu1 %v4706_v30, %s3738_s13  ;;  %s5042_s13 = scalar_lea.vmem [#allocation26], %s4580_s1 }
 0x751   : > { %v1346_v26 = vpop.xlane.xlu0 %1345 }
 0x752   : > { %2930 = vrcp.f32 %v1346_v26 }
 0x759   : > { %v1458_v27 = vpop.xlane.xlu1 %1457 }
 0x75a   : > { %2932 = vrcp.f32 %v1458_v27 }
 0x75c   : > { %v2931_v28 = vpop.eup %2930 }
 0x75d   : > { %v1348_v31 = vmul.f32 %v2931_v28, %v2923_v10  ;;  %v1463_v34 = vpop.permute.xlu1 %1462 }
 0x75e   : > { %v1468_v37 = vsel %vm1355_vm4, %v1463_v34, 0 }
 0x75f   : > { %v1349_v35 = vpack.c.bf16 %v1348_v31, %v1348_v31 }
 0x761   : > { %v1574_v29 = vpop.xlane.xlu0 %1573 }
 0x762   : > { %2934 = vrcp.f32 %v1574_v29  ;;  %v2554_v29 = vld [vmem:[%s5038_s3] ss:$0 sm:$0xff] }
 0x764   : > { %v2933_v36 = vpop.eup %2932 }
 0x765   : > { %v1351_v32 = vpop.permute.xlu0 %1350  ;;  %v1460_v30 = vmul.f32 %v2933_v36, %v2925_v15  ;;  %v2918_v36 = vld [vmem:[%s4642_s17] sm:$0xff]  }
 0x766   : > { %v1357_v33 = vsel %vm1355_vm4, %v1351_v32, 0  ;;  %v2555_v32 = vld [vmem:[%s5039_s16] ss:$0 sm:$0xff] }
 0x767   : > { %2627 = vmatpush3.bf16.msra.mxu0 %v1357_v33  ;;  %v1461_v38 = vpack.c.bf16 %v1460_v30, %v1460_v30  ;;  %v2920_v30 = vld [vmem:[%s4642_s17 + $0x10] sm:$0xff]  }
 0x768   : > { %2638 = vmatprep.subr.bf16.mxu0 %v3726_v21 }
 0x769   : > { %v1695_v44 = vpop.permute.xlu0 %1694 }
 0x76a   : > { %2629 = vmatmul.mubr.msk.bf16.vlgmr.msra.gmra.mrb[4].mxu0 %vm1291_vm3, %v1349_v35  ;;  %v1700_v46 = vsel %vm1355_vm4, %v1695_v44, 0 }
 0x76b   : > { %2639 = vmatpush3.bf16.msra.mxu0 %v1468_v37  ;;  %2640 = vmatprep.mubr.msk.bf16.mxu0 %vm3727_vm1, %v3726_v21  ;;  %v2919_v37 = vld [vmem:[%s4642_s17 + $0x8] sm:$0xff]  }
 0x76c   : > { %2650 = vmatprep.subr.bf16.mxu0 %v3726_v21  ;;  %v2935_v39 = vpop.eup %2934 }
 0x76d   : > { %v1576_v41 = vmul.f32 %v2935_v39, %v2927_v17  ;;  %v2556_v39 = vld [vmem:[%s5040_s5] ss:$0 sm:$0xff] }
 0x76f   : > { %v1577_v45 = vpack.c.bf16 %v1576_v41, %v1576_v41 }
 0x772   : > { %2641 = vmatmul.mubr.msk.bf16.vlgmr.msra.gmra.mrb[8].mxu0 %vm1291_vm3, %v1461_v38  ;;  %v2921_v38 = vld [vmem:[%s4642_s17 + $0x18] sm:$0xff]   ;;  %s5041_s17 = scalar_lea.vmem [#allocation24], %s4580_s1 }
 0x773   : > { %2652 = vmatprep.mubr.msk.bf16.mxu0 %vm3727_vm1, %v3726_v21 }
 0x78e   : > { %v1690_v40 = vpop.xlane.xlu1 %1689 }
 0x78f   : > { %2936 = vrcp.f32 %v1690_v40 }
 0x792   : > { %v1579_v42 = vpop.permute.xlu1 %1578 }
 0x793   : > { %v1584_v43 = vsel %vm1355_vm4, %v1579_v42, 0 }
 0x794   : > { %2651 = vmatpush3.bf16.msra.mxu0 %v1584_v43 }
 0x795   : > { %2662 = vmatprep.subr.bf16.mxu0 %v3726_v21 }
 0x797   : > { %2653 = vmatmul.mubr.msk.bf16.vlgmr.msra.gmra.mrb[12].mxu0 %vm1291_vm3, %v1577_v45 }
 0x798   : > { %2663 = vmatpush3.bf16.msra.mxu0 %v1700_v46  ;;  %2664 = vmatprep.mubr.msk.bf16.mxu0 %vm3727_vm1, %v3726_v21 }
 0x799   : > { %v2937_v47 = vpop.eup %2936  ;;  %2676 = vmatprep.subr.bf16.mxu0 %v3726_v21 }
 0x79a   : > { %v1692_v48 = vmul.f32 %v2937_v47, %v2929_v24  ;;  %v2916_v24 = vld [vmem:[%s5036_s20] sm:$0xff]  }
 0x79c   : > { %v1693_v49 = vpack.c.bf16 %v1692_v48, %v1692_v48 }
 0x79f   : > { %2665 = vmatmul.mubr.msk.bf16.vlgmr.msra.gmra.mrb[16].mxu0 %vm1291_vm3, %v1693_v49 }
 0x7a0   : > { %2680 = vmatprep.mubr.msk.bf16.mxu0 %vm3727_vm1, %v3726_v21  ;;  %2677 = vmatpush3.bf16.msra.mxu0 %v2916_v24 }
 0x7a1   : > { %2678 = vmatprep.subr.bf16.mxu0 %v3726_v21 }
 0x83d   : > { %v1393_v50 = vpop.f32.mrb[4].mxu0 }
 0x83e   : > { %1399 = vst.msk [vmem:[#allocation3] sm:$0xff] %vm1291_vm3, %v1393_v50  ;;  %v2630_v51 = vpop.f32.mrb[5].mxu0 }
 0x83f   : > { %v1396_v52 = vpop.f32.mrb[6].mxu0 }
 0x840   : > { %v2631_v53 = vpop.f32.mrb[7].mxu0 }
 0x845   : > { %v1504_v54 = vpop.f32.mrb[8].mxu0 }
 0x846   : > { %1511 = vrot.lane.b32.xlu1 %v1504_v54, %s3739_s11  ;;  %v2642_v55 = vpop.f32.mrb[9].mxu0  ;;  %v2560_v54 = vld [vmem:[%s5041_s17] ss:$0 sm:$0xff]  ;;  %s5043_s11 = sld [smem:[#allocation54_spill]] }
 0x847   : > { %v1507_v56 = vpop.f32.mrb[10].mxu0 }
 0x848   : > { %v2643_v57 = vpop.f32.mrb[11].mxu0 }
 0x84c   : > { %p2568_p1 = scmp.ne.s32.totalorder %s5043_s11, 1 }
 0x84d   : > { %vm3743_vm9 = vmmov (!%p2568_p1), 0   ;;  %vm2103_vm10 = vcmask (!%p2568_p1), 122880  }
 0x86a   : > { %v1620_v60 = vpop.f32.mrb[12].mxu0 }
 0x86b   : > { %1627 = vrot.lane.b32.xlu0 %v1620_v60, %s3740_s2  ;;  %v2654_v61 = vpop.f32.mrb[13].mxu0 }
 0x86c   : > { %v1623_v62 = vpop.f32.mrb[14].mxu0 }
 0x86d   : > { %v2655_v63 = vpop.f32.mrb[15].mxu0 }
 0x872   : > { %v1736_v0 = vpop.f32.mrb[16].mxu0 }
 0x873   : > { %1743 = vrot.lane.b32.xlu1 %v1736_v0, %s3741_s26  ;;  %v2666_v1 = vpop.f32.mrb[17].mxu0 }
 0x874   : > { %v1739_v2 = vpop.f32.mrb[18].mxu0 }
 0x875   : > { %v2667_v3 = vpop.f32.mrb[19].mxu0 }
 0x8b8   : > { %v1512_v4 = vpop.permute.xlu1 %1511 }
 0x8b9   : > { %1515 = vst.msk [vmem:[#allocation3] sm:$0xff] %vm1514_vm5, %v1512_v4 }
 0x8dd   : > { %v1628_v5 = vpop.permute.xlu0 %1627 }
 0x8de   : > { %1631 = vst.msk [vmem:[#allocation3] sm:$0xff] %vm1630_vm6, %v1628_v5 }
 0x8e5   : > { %v1744_v6 = vpop.permute.xlu1 %1743 }
 0x8e6   : > { %1747 = vst.msk [vmem:[#allocation3] sm:$0xff] %vm1746_vm7, %v1744_v6 }
 0x8ed   : > { %v1748_v7 = vld [vmem:[#allocation3] sm:$0xff] }
 0x8ee   : > { %v1749_v8 = vpack.c.bf16 %v1748_v7, %v1748_v7  ;;  %v2566_v7 = vld [vmem:[%s1035_s8] ss:$0 sm:$0xff] }
 0x8f0   : > { %2673 = vmatmul.mubr.msk.bf16.vlgmr.msra.gmra.mrb[16].mxu1 %vm1237_vm2, %v1749_v8 }
 0x8f1   : > { %2692 = vmatprep.mubr.msk.bf16.mxu1 %vm3727_vm1, %v3726_v21  ;;  %2685 = vmatpush3.bf16.msra.mxu1 %v2918_v36 }
 0x8f2   : > { %2686 = vmatprep.subr.bf16.mxu1 %v3726_v21 }
 0x8f5   : > { %2687 = vmatpush3.bf16.msra.mxu1 %v2919_v37 }
 0x8f6   : > { %2688 = vmatprep.subr.bf16.mxu1 %v3726_v21 }
 0x8f9   : > { %2689 = vmatpush3.bf16.msra.mxu1 %v2920_v30 }
 0x8fa   : > { %2690 = vmatprep.subr.bf16.mxu1 %v3726_v21 }
 0x8fd   : > { %2691 = vmatpush3.bf16.msra.mxu1 %v2921_v38 }
 0x9c3   : > { %v1810_v10 = vpop.f32.mrb[16].mxu1 }
 0x9c4   : > { %v1811_v11 = vadd.f32 %v2550_v9, %v1810_v10  ;;  %v2674_v12 = vpop.f32.mrb[17].mxu1  ;;  %v2567_v9 = vld [vmem:[%s5042_s13] ss:$0 sm:$0xff] }
 0x9c5   : > { %v1813_v13 = vpop.f32.mrb[18].mxu1  ;;  %v2944_v12 = vld [vmem:[#allocation27] sm:$0xff] (!%p2568_p1)  }
 0x9c6   : > { %v2675_v14 = vpop.f32.mrb[19].mxu1  ;;  %v1816_v15 = vadd.f32 %v1811_v11, %v4693_v23  ;;  %v2917_v23 = vld [vmem:[%s5037_s14 + $0x8] sm:$0xff]   ;;  %v3742_v13 = vmov (!%p2568_p1), 0.0  }
 0x9c7   : > { %2679 = vmatpush3.bf16.msra.mxu0 %v2917_v23  ;;  %v2945_v14 = vld [vmem:[#allocation27 + $0x8] sm:$0xff] (!%p2568_p1)  }
 0x9c8   : > { %v1819_v16 = vsel %vm1237_vm2, %v1816_v15, 0.0  ;;  %2696 = vmatprep.subr.bf16.mxu0 (!%p2568_p1), %v3742_v13 }
 0x9c9   : > { %1820 = vadd.xlane.f32.xlu0 %v1819_v16  ;;  %v2047_v16 = vld [vmem:[#allocation28] sm:$0x1] (!%p2568_p1) }
 0xa56   : > { %v1821_v17 = vpop.xlane.xlu0 %1820 }
 0xa57   : > { %v1823_v18 = vmul.f32 0.03125, %v1821_v17 }
 0xa59   : > { %v1824_v19 = vsub.f32 %v1816_v15, %v1823_v18 }
 0xa5b   : > { %v1825_v20 = vmul.f32 %v1824_v19, %v1824_v19 }
 0xa5d   : > { %v1826_v22 = vsel %vm1237_vm2, %v1825_v20, 0.0 }
 0xa5e   : > { %1827 = vadd.xlane.f32.xlu1 %v1826_v22 }
 0xaeb   : > { %v1828_v25 = vpop.xlane.xlu1 %1827 }
 0xaec   : > { %v1829_v26 = vmul.f32 0.03125, %v1828_v25 }
 0xaee   : > { %v1830_v27 = vadd.f32 1e-12, %v1829_v26 }
 0xaf0   : > { %2938 = vrsqrt.f32 %v1830_v27 }
 0xafa   : > { %v2939_v28 = vpop.eup %2938 }
 0xafb   : > { %v1832_v31 = vmul.f32 %v2939_v28, %v1824_v19 }
 0xafd   : > { %v1839_v33 = vmul.f32 %v2554_v29, %v1832_v31 }
 0xaff   : > { %v1846_v34 = vadd.f32 %v2555_v32, %v1839_v33 }
 0xb01   : > { %v1847_v35 = vpack.c.bf16 %v1846_v34, %v1846_v34 }
 0xb03   : > { %2681 = vmatmul.mubr.msk.bf16.vlgmr.msra.gmra.mrb[20].mxu0 %vm1237_vm2, %v1847_v35 }
 0xb04   : > { %2697 = vmatpush3.bf16.msra.mxu0 (!%p2568_p1), %v2944_v12  ;;  %2700 = vmatprep.mubr.msk.bf16.mxu0 (!%p2568_p1), %vm3743_vm9, %v3742_v13 }
 0xb05   : > { %2698 = vmatprep.subr.bf16.mxu0 (!%p2568_p1), %v3742_v13 }
 0xb08   : > { %2699 = vmatpush3.bf16.msra.mxu0 (!%p2568_p1), %v2945_v14 }
 0xbd6   : > { %v1908_v40 = vpop.f32.mrb[20].mxu0 }
 0xbd7   : > { %v1909_v41 = vadd.f32 %v2556_v39, %v1908_v40  ;;  %v2682_v42 = vpop.f32.mrb[21].mxu0 }
 0xbd8   : > { %v1911_v43 = vpop.f32.mrb[22].mxu0 }
 0xbd9   : > { %v1915_v44 = vmul.f32 0.044715, %v1909_v41  ;;  %v2683_v45 = vpop.f32.mrb[23].mxu0  ;;  %v1914_v51 = vmul.f32 0.5, %v1909_v41 }
 0xbdb   : > { %v1916_v46 = vmul.f32 %v1915_v44, %v1909_v41 }
 0xbdd   : > { %v1917_v47 = vmul.f32 %v1916_v46, %v1909_v41 }
 0xbdf   : > { %v1918_v48 = vadd.f32 %v1917_v47, %v1909_v41 }
 0xbe1   : > { %v1919_v49 = vmul.f32 0.7978846, %v1918_v48 }
 0xbe3   : > { %2940 = vtanh.f32 %v1919_v49 }
 0xbed   : > { %v2941_v50 = vpop.eup %2940 }
 0xbee   : > { %v1921_v52 = vadd.f32 1.0, %v2941_v50 }
 0xbf0   : > { %v1922_v53 = vmul.f32 %v1921_v52, %v1914_v51 }
 0xbf2   : > { %v1923_v21 = vpack.c.bf16 %v1922_v53, %v1922_v53 }
 0xbf4   : > { %2693 = vmatmul.mubr.msk.bf16.vlgmr.msra.gmra.mrb[20].mxu1 %vm1963_vm8, %v1923_v21 }
 0xcc7   : > { %v2001_v55 = vpop.f32.mrb[20].mxu1 }
 0xcc8   : > { %v2002_v56 = vadd.f32 %v2560_v54, %v2001_v55  ;;  %v2694_v57 = vpop.f32.mrb[21].mxu1 }
 0xcc9   : > { %v2004_v58 = vpop.f32.mrb[22].mxu1 }
 0xcca   : > { %v2695_v59 = vpop.f32.mrb[23].mxu1  ;;  %v2007_v60 = vadd.f32 %v2002_v56, %v1846_v34 }
 0xccc   : > { %v2010_v61 = vsel %vm1237_vm2, %v2007_v60, 0.0 }
 0xccd   : > { %2011 = vadd.xlane.f32.xlu0 %v2010_v61 }
 0xd5a   : > { %v2012_v62 = vpop.xlane.xlu0 %2011 }
 0xd5b   : > { %v2013_v63 = vmul.f32 0.03125, %v2012_v62 }
 0xd5d   : > { %v2014_v0 = vsub.f32 %v2007_v60, %v2013_v63 }
 0xd5f   : > { %v2015_v1 = vmul.f32 %v2014_v0, %v2014_v0 }
 0xd61   : > { %v2016_v2 = vsel %vm1237_vm2, %v2015_v1, 0.0 }
 0xd62   : > { %2017 = vadd.xlane.f32.xlu0 %v2016_v2 }
 0xdef   : > { %v2018_v3 = vpop.xlane.xlu0 %2017 }
 0xdf0   : > { %v2019_v4 = vmul.f32 0.03125, %v2018_v3 }
 0xdf2   : > { %v2020_v5 = vadd.f32 1e-12, %v2019_v4 }
 0xdf4   : > { %2942 = vrsqrt.f32 %v2020_v5 }
 0xdfe   : > { %v2943_v6 = vpop.eup %2942 }
 0xdff   : > { %v2022_v8 = vmul.f32 %v2943_v6, %v2014_v0  ;;  %2041 = sbr.rel (%p2568_p1) target bundleno = 3806 (0xede), region = 188 }
 0xe01   : > { %v2029_v10 = vmul.f32 %v2566_v7, %v2022_v8 }
 0xe03   : > { %v2036_v11 = vadd.f32 %v2567_v9, %v2029_v10 }
 0xe05   : > { %2037 = vst.msk [vmem:[#allocation2] sm:$0xff] %vm1237_vm2, %v2036_v11  ;;  %v2042_v15 = vpack.c.bf16 (!%p2568_p1), %v2036_v11, %v2036_v11 }
 0xe07   : > { %2701 = vmatmul.mubr.msk.bf16.vlgmr.msra.gmra.mrb[0].mxu0 %vm1237_vm2, %v2042_v15 }
 0xeda   : > { %v2097_v17 = vpop.f32.mrb[0].mxu0 }
 0xedb   : > { %v2098_v18 = vadd.f32 %v2097_v17, %v2047_v16  ;;  %v2702_v19 = vpop.f32.mrb[1].mxu0 }
 0xedc   : > { %v2100_v20 = vpop.f32.mrb[2].mxu0 }
 0xedd   : > { %2104 = vst.msk [vmem:[%s1162_s24] sm:$0x1] %vm2103_vm10, %v2098_v18  ;;  %v2703_v22 = vpop.f32.mrb[3].mxu0 }
 0xede PF: > { %s5044_s1 = sld [smem:[#allocation55_spill]]  ;;  %s5045_s8 = sld [smem:[#allocation63_spill]] }
 0xedf   : > { %s5046_s20 = sld [smem:[#allocation83_spill]]  ;;  %s2118_s3 = sshll.u32 %s1162_s24, 4  ;;  %s2119_s3 = int_to_ptr.vmem [resolvable:$true] %s2118_s3 }
 0xee0   : > { %s2106_s16 = scalar_lea.sflag [#allocation6], %s4545_s22  ;;  %s3506_s5 = scalar_lea.vmem %s2119_s3, 16 }
 0xee1   : > { %p3507_p13 = scmp.ne.s32.totalorder %s2119_s3, %s3506_s5  ;;  %s3744_s17 = smov [#allocation30]  }
 0xee2   : > { %s3510_s13 = sshll.u32 %s3744_s17, 4  ;;  %s3511_s13 = int_to_ptr.vmem [resolvable:$false] %s3510_s13 }
 0xee3   : > { %s3512_s11 = scalar_lea.vmem %s3511_s13, 32  ;;  %p3513_p4 = scmp.lt.s32.totalorder %s2119_s3, %s3511_s13 }
 0xee4   : > { %s2572_s2 = sshll.u32 %s5044_s1, 4  ;;  %p5047_p8 = scmp.ne.s32.totalorder %s5045_s8, 0 }
 0xee5   : > { %s4821_s14 = scalar_lea.hbm %s5046_s20, %s2572_s2  ;;  %p3514_p11 = scmp.lt.s32.totalorder %s3512_s11, %s3506_s5 }
 0xee6   : > { %p3508_p12 = pnand %p3507_p13, %p5047_p8 }
 0xee7   : > { %p3515_p6 = por %p3514_p11, %p3513_p4 }
 0xee8   : > { %p3509_p0 = pneg %p3508_p12 }
 0xeea   : > { %p3516_p5 = pnand %p3515_p6, %p3509_p0 }
 0xeec   : > { %3519 = shalt.err (!%p3516_p5)
}
 0xeed   : > { %s3520_s22 = scalar_lea.hbm %s4821_s14, 16  ;;  %s3524_s2 = scalar_lea.hbm %s5046_s20, 32 }
 0xeee   : > { %p3521_p10 = scmp.ne.s32.totalorder %s4821_s14, %s3520_s22  ;;  %p3525_p7 = scmp.lt.u32.totalorder %s4821_s14, %s5046_s20 }
 0xeef   : > { %p3526_p2 = scmp.lt.u32.totalorder %s3524_s2, %s3520_s22  ;;  %p3528_p13 = scmp.lt.u32.totalorder %s3520_s22, %s4821_s14 }
 0xef0   : > { %p3522_p3 = pnand %p3521_p10, %p5047_p8 }
 0xef1   : > { %p3527_p1 = por %p3526_p2, %p3525_p7 }
 0xef2   : > { %p3523_p9 = pneg %p3522_p3 }
 0xef3   : > { %p3529_p12 = por %p3528_p13, %p3527_p1 }
 0xef5   : > { %p3530_p0 = pnand %p3529_p12, %p3523_p9 }
 0xef7   : > { %3533 = shalt.err (!%p3530_p0)
}
 0xef8   : > { %2756 = dma.vmem_to_hbm [thread:$0]  (%p5047_p8), %s2119_s3, 16, %s4821_s14, %s2106_s16  }
 0xef9 PF: > { %s5048_s5 = sld [smem:[#allocation52_spill]]  ;;  %s5049_s17 = sld [smem:[#allocation64_spill]] }
 0xefa   : > { %p2793_p4 = scmp.ge.s32.totalorder %s3700_s4, 2 }
 0xeff   : > { %s2130_s13 = sand.u32 1, %s5048_s5   ;;  %p5050_p11 = scmp.ne.s32.totalorder %s5049_s17, 0 }
 0xf00   : > { %s2131_s11 = scalar_lea.sflag [#allocation6], %s2130_s13 }
 0xf01   : > { %p2778_p6 = pnand %p2793_p4, %p5050_p11 }
 0xf03   : > { %3655 = dma.done.wait (!%p2778_p6), %s2131_s11, 16  }
 0xf04   : > { %3657 = vsyncadd (!%p2778_p6), %s2131_s11, 4294967280  ;;  %s42_s4 = sadd.s32 1, %s3700_s4   ;;  %s5051_s1 = sld [smem:[#allocation51_spill]] }
 0xf05   : > { %p39_p5 = scmp.ge.s32.totalorder %s42_s4, 6   ;;  %s5052_s24 = sld [smem:[#allocation60_spill]] }
 0xf06   : > { %s5053_s8 = sld [smem:[#allocation53_spill]]  ;;  %s5054_s14 = sld [smem:[#allocation61_spill]] }
 0xf07   : > { %s5055_s16 = sld [smem:[#allocation57_spill]]  ;;  %s5056_s30 = sld [smem:[#allocation58_spill]] }
 0xf08   : > { %s5057_s22 = smov %s3668_s23  ;;  %s5060_s2 = smov %s3680_s25 }
 0xf09   : > { %s5062_s3 = smov %s3692_s27  ;;  %s5063_s26 = smov %s3696_s28 }
 0xf0a   :  { %41 = sbr.rel (!%p39_p5) target bundleno = 33 (0x21), region = 322 }
 0xf0b   : > { %s5058_s23 = smov %s5052_s24 }
 0xf0c   : > { %s5059_s24 = smov %s5053_s8  ;;  %s5061_s25 = smov %s5054_s14 }
 0xf0d   : > { %s5064_s27 = smov %s5055_s16  ;;  %s5065_s28 = smov %s5056_s30 }
 0xf11   :  { %2135 = vsyncpa [#allocation5], 1 }
 0xf12   :  { %2137 = vsyncpa [#allocation5 + $0x1], 1 }
 0xf13   :  { %2138 = vsyncpa [#allocation8], 1 }
 0xf14   :  { %2139 = vsyncpa [#allocation11], 1 }
 0xf15   :  { %2141 = vsyncpa [#allocation11 + $0x1], 1 }
 0xf16   :  { %2142 = vsyncpa [#allocation14], 1 }
 0xf17   :  { %2143 = vsyncpa [#allocation29], 1 }
 0xf18   :  { %2144 = vsyncpa [#allocation6], 1 }
 0xf19   :  { %2146 = vsyncpa [#allocation6 + $0x1], 1 }

</bundles_post_ra>
